<compile_context>
chip_gen: v7x
topology: tpu7x:2x2x1
jax: 0.10.0
libtpu: 0.0.40
codegen_flags: <defaults>
</compile_context>

<pallas_src>
import jax
import jax.numpy as jnp
import numpy as np
from jax.experimental import pallas as pl
from jax.experimental.pallas import tpu as pltpu

# ----------------------------- configuration ------------------------------
DIM = 32                 # input feature dim
CODEBOOK_SIZE = 256      # power of 2
CODEBOOK_DIM = 8         # log2(codebook_size)
NUM_CODEBOOKS = 1
CODEBOOK_SCALE = 1.0

B, H, W = 2, 32, 32      # input x: (B, DIM, H, W)  (NCHW, like the PyTorch module)
MIN_GRID_STEPS = 4       # >= 2 grid steps per TensorCore on v7x (2 TCs/chip)


# ------------------------------- kernel -----------------------------------
def lfq_kernel(x_ref, w_dist_ref, b_dist_ref, w_in_t_ref, b_in_ref,
               w_out_t_ref, b_out_ref, maskbits_ref,
               y_ref, idx_ref, dist_ref):
    # x_ref:        (DIM, TM)          f32  NCHW orientation: channels on sublanes
    # w_dist_ref:   (DIM, 256)         f32  = -2 * w_in @ codebook^T  (project_in folded in)
    # b_dist_ref:   (1, 256)           f32  = -2 * b_in @ codebook^T
    # w_in_t_ref:   (CODEBOOK_DIM, DIM) f32 = w_in^T
    # b_in_ref:     (CODEBOOK_DIM, 1)  f32
    # w_out_t_ref:  (DIM, CODEBOOK_DIM) f32 = w_out^T
    # b_out_ref:    (DIM, 1)           f32
    # maskbits_ref: (CODEBOOK_DIM, 1)  i32  [128, 64, ..., 1]
    # y_ref:        (DIM, TM)          f32  (already NCHW -> no XLA transpose afterwards)
    # idx_ref:      (1, TM)            i32
    # dist_ref:     (TM, 256)          f32
    x_cols = x_ref[...]                                   # (DIM, TM)

    # distance = -2 * project_in(x) @ codebook^T with project_in folded into w_dist.
    # The row-major (TM, 256) orientation matches the module's (b, n, 1, j) output,
    # so this is the only in-kernel transpose (XLU has full slack here).
    x_rows = x_cols.T                                     # (TM, DIM)
    dist_ref[...] = (jnp.dot(x_rows, w_dist_ref[...],
                             preferred_element_type=jnp.float32)
                     + b_dist_ref[...])                   # (TM, 256)

    # project_in in the transposed orientation: h_t[d, t]
    # (could pass precision=HIGHEST here if bit-exact sign parity mattered)
    h_t = (jnp.dot(w_in_t_ref[...], x_cols, preferred_element_type=jnp.float32)
           + b_in_ref[...])                               # (CODEBOOK_DIM, TM)

    # quantize: sign * codebook_scale.  STE forward value (x - x.detach() + q) == q.
    pos = h_t > 0
    q_t = jnp.where(pos, CODEBOOK_SCALE, -CODEBOOK_SCALE).astype(jnp.float32)

    # indices: bit-pack of the sign bits (cheap sublane reduce over the 8-wide axis)
    idx_ref[...] = jnp.sum(pos.astype(jnp.int32) * maskbits_ref[...],
                           axis=0, keepdims=True)         # (1, TM)

    # project_out on the quantized values, produced directly in NCHW orientation.
    y_ref[...] = (jnp.dot(w_out_t_ref[...], q_t, preferred_element_type=jnp.float32)
                  + b_out_ref[...])                       # (DIM, TM)


# ------------------------------- wrapper -----------------------------------
def _pick_tile(hw, batch, max_tile=1024, min_steps=MIN_GRID_STEPS):
    """Largest lane-aligned tile of the flattened spatial axis such that the
    total grid has >= min_steps steps (pipelining / megacore occupancy).
    TM is never reduced for VMEM reasons (working set is tiny)."""
    candidates = [t for t in (2048, 1024, 512, 256, 128) if t <= max_tile]
    for t in candidates:
        if hw % t == 0 and batch * (hw // t) >= min_steps:
            return t
    for t in candidates:          # fallback: at least keep the 128-lane alignment
        if hw % t == 0:
            return t
    raise ValueError(f"flattened spatial size {hw} must be a multiple of 128")


def prepare_lfq_params(w_in, b_in, w_out, b_out, maskbits, codebook):
    """One-time precompute of kernel-side parameter layouts (hoisted out of the
    per-forward path per the review)."""
    hi = jax.lax.Precision.HIGHEST
    w_dist = -2.0 * jnp.einsum('de,je->dj', w_in, codebook, precision=hi)     # (DIM, 256)
    b_dist = (-2.0 * jnp.einsum('e,je->j', b_in, codebook, precision=hi)
              ).reshape(1, CODEBOOK_SIZE)
    return dict(
        w_dist=w_dist.astype(jnp.float32),
        b_dist=b_dist.astype(jnp.float32),
        w_in_t=jnp.transpose(w_in).astype(jnp.float32),                       # (8, DIM)
        b_in=b_in.reshape(CODEBOOK_DIM, 1).astype(jnp.float32),
        w_out_t=jnp.transpose(w_out).astype(jnp.float32),                     # (DIM, 8)
        b_out=b_out.reshape(DIM, 1).astype(jnp.float32),
        maskbits=maskbits.reshape(CODEBOOK_DIM, 1).astype(jnp.int32),
    )


@jax.jit
def lfq_forward(x_nchw, mask, params):
    if mask is None:
        raise NotImplementedError('mask')   # matches the torch forward

    bsz, d, hgt, wid = x_nchw.shape
    assert d == DIM
    hw = hgt * wid
    tm = _pick_tile(hw, bsz)
    nchunks = hw // tm
    m = bsz * hw

    # NCHW -> (b, d, h*w): contiguous reshape, no data movement; the layout change
    # to (rows, features) happens inside the kernel.
    x3 = x_nchw.reshape(bsz, d, hw)

    # advisory cost estimate so XLA schedules around the custom call sensibly
    flops = 2 * m * (DIM * CODEBOOK_SIZE + DIM * CODEBOOK_DIM + CODEBOOK_DIM * DIM)
    bytes_accessed = (4 * m * (2 * DIM + CODEBOOK_SIZE + NUM_CODEBOOKS)
                      + 4 * (DIM * CODEBOOK_SIZE + CODEBOOK_SIZE
                             + 2 * DIM * CODEBOOK_DIM + DIM + 2 * CODEBOOK_DIM))
    cost = pl.CostEstimate(flops=flops, transcendentals=0,
                           bytes_accessed=bytes_accessed)

    y3, idx3, dist3 = pl.pallas_call(
        lfq_kernel,
        out_shape=(
            jax.ShapeDtypeStruct((bsz, DIM, hw), jnp.float32),            # y (already NCHW)
            jax.ShapeDtypeStruct((bsz, 1, hw), jnp.int32),                # indices
            jax.ShapeDtypeStruct((bsz, hw, CODEBOOK_SIZE), jnp.float32),  # distance
        ),
        grid_spec=pltpu.PrefetchScalarGridSpec(
            num_scalar_prefetch=0,
            grid=(bsz, nchunks),
            in_specs=[
                pl.BlockSpec((None, DIM, tm), lambda b, c: (b, 0, c)),        # x
                pl.BlockSpec((DIM, CODEBOOK_SIZE), lambda b, c: (0, 0)),       # w_dist
                pl.BlockSpec((1, CODEBOOK_SIZE), lambda b, c: (0, 0)),         # b_dist
                pl.BlockSpec((CODEBOOK_DIM, DIM), lambda b, c: (0, 0)),        # w_in_t
                pl.BlockSpec((CODEBOOK_DIM, 1), lambda b, c: (0, 0)),          # b_in
                pl.BlockSpec((DIM, CODEBOOK_DIM), lambda b, c: (0, 0)),        # w_out_t
                pl.BlockSpec((DIM, 1), lambda b, c: (0, 0)),                   # b_out
                pl.BlockSpec((CODEBOOK_DIM, 1), lambda b, c: (0, 0)),          # maskbits
            ],
            out_specs=[
                pl.BlockSpec((None, DIM, tm), lambda b, c: (b, 0, c)),         # y
                pl.BlockSpec((None, 1, tm), lambda b, c: (b, 0, c)),           # idx
                pl.BlockSpec((None, tm, CODEBOOK_SIZE), lambda b, c: (b, c, 0)),  # dist
            ],
        ),
        compiler_params=pltpu.CompilerParams(
            dimension_semantics=("parallel", "parallel"),
            vmem_limit_bytes=32 * 1024 * 1024,   # headroom on v5e's 16 MiB scoped default
        ),
        cost_estimate=cost,
    )(x3, params['w_dist'], params['b_dist'], params['w_in_t'], params['b_in'],
      params['w_out_t'], params['b_out'], params['maskbits'])

    # All remaining glue is contiguous (free) reshapes — no XLA transposes.
    y = y3.reshape(bsz, DIM, hgt, wid)                                 # (b, d, h, w)
    indices = idx3.reshape(bsz, hgt, wid)                              # keep_num_codebooks_dim=False
    distance = dist3.reshape(bsz, hw, NUM_CODEBOOKS, CODEBOOK_SIZE)

    # TODO(synk): commit_loss uses masked_mean(), which is not defined in the provided source; returning 0.0.
    commit_loss = jnp.float32(0.0)
    return y, indices, commit_loss, distance


# ---------------------------- reference (plain JAX) -------------------------
def lfq_reference(x_nchw, w_in, b_in, w_out, b_out, maskbits, codebook):
    bsz, d, hgt, wid = x_nchw.shape
    hi = jax.lax.Precision.HIGHEST
    xf = jnp.transpose(x_nchw, (0, 2, 3, 1)).reshape(bsz, hgt * wid, d)
    hh = jnp.einsum('bnd,de->bne', xf, w_in, precision=hi) + b_in
    q = jnp.where(hh > 0, CODEBOOK_SCALE, -CODEBOOK_SCALE).astype(jnp.float32)
    idx = jnp.sum((hh > 0).astype(jnp.int32) * maskbits.astype(jnp.int32), axis=-1)
    dist = -2.0 * jnp.einsum('bnd,jd->bnj', hh, codebook, precision=hi)
    y = jnp.einsum('bne,ed->bnd', q, w_out, precision=hi) + b_out
    y = y.reshape(bsz, hgt, wid, d).transpose(0, 3, 1, 2)
    return (y, idx.reshape(bsz, hgt, wid),
            dist.reshape(bsz, hgt * wid, NUM_CODEBOOKS, CODEBOOK_SIZE), hh)


# --------------------------------- main -------------------------------------
if __name__ == "__main__":
    key = jax.random.PRNGKey(0)
    k_x, k_wi, k_bi, k_wo, k_bo = jax.random.split(key, 5)

    # deterministic synthetic parameters (torch Linear weights stored pre-transposed: (in, out))
    w_in = jax.random.normal(k_wi, (DIM, CODEBOOK_DIM), jnp.float32) / np.sqrt(DIM)
    b_in = jax.random.normal(k_bi, (CODEBOOK_DIM,), jnp.float32) * 0.1
    w_out = jax.random.normal(k_wo, (CODEBOOK_DIM, DIM), jnp.float32) / np.sqrt(CODEBOOK_DIM)
    b_out = jax.random.normal(k_bo, (DIM,), jnp.float32) * 0.1

    # codebook buffers (as in __init__)
    maskbits = (2 ** jnp.arange(CODEBOOK_DIM - 1, -1, -1)).astype(jnp.int32)      # (d,)
    codes = jnp.arange(CODEBOOK_SIZE, dtype=jnp.int32)
    bits = ((codes[:, None] & maskbits) != 0).astype(jnp.float32)                 # (2^d, d)
    codebook = bits * CODEBOOK_SCALE * 2 - CODEBOOK_SCALE                         # (2^d, d)

    # inputs
    x = jax.random.normal(k_x, (B, DIM, H, W), jnp.float32)
    mask = jnp.ones((B, H * W), dtype=bool)   # required non-None by the forward

    # one-time weight-side precompute (hoisted out of the per-call path)
    params = prepare_lfq_params(w_in, b_in, w_out, b_out, maskbits, codebook)
    jax.block_until_ready(params)

    y, indices, commit_loss, distance = lfq_forward(x, mask, params)
    jax.block_until_ready((y, indices, commit_loss, distance))

    # correctness check against plain-JAX reference
    y_r, idx_r, dist_r, h_r = lfq_reference(x, w_in, b_in, w_out, b_out, maskbits, codebook)

    # distance does not depend on the sign threshold -> compare everywhere
    np.testing.assert_allclose(np.asarray(distance), np.asarray(dist_r), rtol=1e-3, atol=1e-3)

    # rows whose pre-quantization activations sit within 1e-3 of zero could have their
    # sign flipped by fp reassociation (MXU vs HIGHEST einsum); exclude them from the
    # sign-dependent checks. Virtually all rows remain checked.
    safe = np.all(np.abs(np.asarray(h_r)) > 1e-3, axis=-1).reshape(B, H, W)
    assert safe.mean() > 0.9
    np.testing.assert_array_equal(np.asarray(indices)[safe], np.asarray(idx_r)[safe])
    y_nhwc = np.asarray(y).transpose(0, 2, 3, 1)
    y_r_nhwc = np.asarray(y_r).transpose(0, 2, 3, 1)
    np.testing.assert_allclose(y_nhwc[safe], y_r_nhwc[safe], rtol=1e-3, atol=1e-3)

    assert y.shape == (B, DIM, H, W)
    assert indices.shape == (B, H, W) and indices.dtype == jnp.int32
    assert distance.shape == (B, H * W, NUM_CODEBOOKS, CODEBOOK_SIZE)

    print("KERNEL_OK")
</pallas_src>

<mosaic_0001>
module attributes {stable_mosaic.version = 11 : i64} {
  func.func @lfq_kernel(%arg0: i32, %arg1: i32, %arg2: memref<1x32x512xf32, #tpu.memory_space<vmem>>, %arg3: memref<32x256xf32, #tpu.memory_space<vmem>>, %arg4: memref<1x256xf32, #tpu.memory_space<vmem>>, %arg5: memref<8x32xf32, #tpu.memory_space<vmem>>, %arg6: memref<8x1xf32, #tpu.memory_space<vmem>>, %arg7: memref<32x8xf32, #tpu.memory_space<vmem>>, %arg8: memref<32x1xf32, #tpu.memory_space<vmem>>, %arg9: memref<8x1xi32, #tpu.memory_space<vmem>>, %arg10: memref<1x32x512xf32, #tpu.memory_space<vmem>>, %arg11: memref<1x1x512xi32, #tpu.memory_space<vmem>>, %arg12: memref<1x512x256xf32, #tpu.memory_space<vmem>>) attributes {dimension_semantics = [#tpu.dimension_semantics<parallel>, #tpu.dimension_semantics<parallel>], iteration_bounds = array<i64: 2, 2>, scalar_prefetch = 0 : i64, scratch_operands = 0 : i64, tpu.core_type = #tpu.core_type<tc>, window_params = [{transform_indices = @transform_0, window_bounds = array<i64: 1, 32, 512>}, {pipeline_mode = #tpu.pipeline_mode<synchronous>, transform_indices = @transform_1, window_bounds = array<i64: 32, 256>}, {pipeline_mode = #tpu.pipeline_mode<synchronous>, transform_indices = @transform_2, window_bounds = array<i64: 1, 256>}, {pipeline_mode = #tpu.pipeline_mode<synchronous>, transform_indices = @transform_3, window_bounds = array<i64: 8, 32>}, {pipeline_mode = #tpu.pipeline_mode<synchronous>, transform_indices = @transform_4, window_bounds = array<i64: 8, 1>}, {pipeline_mode = #tpu.pipeline_mode<synchronous>, transform_indices = @transform_5, window_bounds = array<i64: 32, 8>}, {pipeline_mode = #tpu.pipeline_mode<synchronous>, transform_indices = @transform_6, window_bounds = array<i64: 32, 1>}, {pipeline_mode = #tpu.pipeline_mode<synchronous>, transform_indices = @transform_7, window_bounds = array<i64: 8, 1>}, {transform_indices = @transform_8, window_bounds = array<i64: 1, 32, 512>}, {transform_indices = @transform_9, window_bounds = array<i64: 1, 1, 512>}, {transform_indices = @transform_10, window_bounds = array<i64: 1, 512, 256>}]} {
    %c0 = arith.constant 0 : index
    %c0_0 = arith.constant 0 : index
    %c0_1 = arith.constant 0 : index
    %0 = vector.load %arg2[%c0, %c0_0, %c0_1] : memref<1x32x512xf32, #tpu.memory_space<vmem>>, vector<1x32x512xf32>
    %1 = vector.shape_cast %0 : vector<1x32x512xf32> to vector<32x512xf32>
    %2 = tpu.transpose %1, [1, 0] : vector<32x512xf32> -> vector<512x32xf32>
    %c0_2 = arith.constant 0 : index
    %c0_3 = arith.constant 0 : index
    %3 = vector.load %arg3[%c0_2, %c0_3] : memref<32x256xf32, #tpu.memory_space<vmem>>, vector<32x256xf32>
    %cst = arith.constant dense<0.000000e+00> : vector<512x256xf32>
    %4 = tpu.matmul %2, %3, %cst {dimension_numbers = #tpu.dot_dimension_numbers<[1], [0], [0], [1], [0, 0, 1, 1], [], []>} : vector<512x32xf32>, vector<32x256xf32>, vector<512x256xf32> -> vector<512x256xf32>
    %c0_4 = arith.constant 0 : index
    %c0_5 = arith.constant 0 : index
    %5 = vector.load %arg4[%c0_4, %c0_5] : memref<1x256xf32, #tpu.memory_space<vmem>>, vector<1x256xf32>
    %6 = vector.broadcast %5 : vector<1x256xf32> to vector<512x256xf32>
    %7 = arith.addf %4, %6 : vector<512x256xf32>
    %c0_6 = arith.constant 0 : index
    %c0_7 = arith.constant 0 : index
    %c0_8 = arith.constant 0 : index
    %8 = vector.load %arg12[%c0_6, %c0_7, %c0_8] : memref<1x512x256xf32, #tpu.memory_space<vmem>>, vector<1x512x256xf32>
    %9 = vector.shape_cast %8 : vector<1x512x256xf32> to vector<512x256xf32>
    %10 = vector.shape_cast %7 : vector<512x256xf32> to vector<1x512x256xf32>
    tpu.vector_store %arg12[%c0_6, %c0_7, %c0_8], %10 {strides = array<i32>} : memref<1x512x256xf32, #tpu.memory_space<vmem>>, vector<1x512x256xf32>,
    %c0_9 = arith.constant 0 : index
    %c0_10 = arith.constant 0 : index
    %11 = vector.load %arg5[%c0_9, %c0_10] : memref<8x32xf32, #tpu.memory_space<vmem>>, vector<8x32xf32>
    %cst_11 = arith.constant dense<0.000000e+00> : vector<8x512xf32>
    %12 = tpu.matmul %11, %1, %cst_11 {dimension_numbers = #tpu.dot_dimension_numbers<[1], [0], [0], [1], [0, 0, 1, 1], [], []>} : vector<8x32xf32>, vector<32x512xf32>, vector<8x512xf32> -> vector<8x512xf32>
    %c0_12 = arith.constant 0 : index
    %c0_13 = arith.constant 0 : index
    %13 = vector.load %arg6[%c0_12, %c0_13] : memref<8x1xf32, #tpu.memory_space<vmem>>, vector<8x1xf32>
    %14 = vector.broadcast %13 : vector<8x1xf32> to vector<8x512xf32>
    %15 = arith.addf %12, %14 : vector<8x512xf32>
    %cst_14 = arith.constant 0.000000e+00 : f32
    %16 = vector.broadcast %cst_14 : f32 to vector<8x512xf32>
    %17 = arith.cmpf ogt, %15, %16 : vector<8x512xf32>
    %cst_15 = arith.constant 1.000000e+00 : f32
    %cst_16 = arith.constant -1.000000e+00 : f32
    %18 = vector.broadcast %cst_15 : f32 to vector<8x512xf32>
    %19 = vector.broadcast %cst_16 : f32 to vector<8x512xf32>
    %20 = arith.select %17, %18, %19 : vector<8x512xi1>, vector<8x512xf32>
    %21 = arith.extui %17 : vector<8x512xi1> to vector<8x512xi32>
    %c0_17 = arith.constant 0 : index
    %c0_18 = arith.constant 0 : index
    %22 = vector.load %arg9[%c0_17, %c0_18] : memref<8x1xi32, #tpu.memory_space<vmem>>, vector<8x1xi32>
    %23 = vector.broadcast %22 : vector<8x1xi32> to vector<8x512xi32>
    %24 = arith.muli %21, %23 : vector<8x512xi32>
    %cst_19 = arith.constant dense<0> : vector<512xi32>
    %25 = vector.multi_reduction <add>, %24, %cst_19 [0] : vector<8x512xi32> to vector<512xi32>
    %26 = vector.shape_cast %25 : vector<512xi32> to vector<1x512xi32>
    %c0_20 = arith.constant 0 : index
    %c0_21 = arith.constant 0 : index
    %c0_22 = arith.constant 0 : index
    %27 = vector.load %arg11[%c0_20, %c0_21, %c0_22] : memref<1x1x512xi32, #tpu.memory_space<vmem>>, vector<1x1x512xi32>
    %28 = vector.shape_cast %27 : vector<1x1x512xi32> to vector<1x512xi32>
    %29 = vector.shape_cast %26 : vector<1x512xi32> to vector<1x1x512xi32>
    tpu.vector_store %arg11[%c0_20, %c0_21, %c0_22], %29 {strides = array<i32>} : memref<1x1x512xi32, #tpu.memory_space<vmem>>, vector<1x1x512xi32>,
    %c0_23 = arith.constant 0 : index
    %c0_24 = arith.constant 0 : index
    %30 = vector.load %arg7[%c0_23, %c0_24] : memref<32x8xf32, #tpu.memory_space<vmem>>, vector<32x8xf32>
    %cst_25 = arith.constant dense<0.000000e+00> : vector<32x512xf32>
    %31 = tpu.matmul %30, %20, %cst_25 {dimension_numbers = #tpu.dot_dimension_numbers<[1], [0], [0], [1], [0, 0, 1, 1], [], []>} : vector<32x8xf32>, vector<8x512xf32>, vector<32x512xf32> -> vector<32x512xf32>
    %c0_26 = arith.constant 0 : index
    %c0_27 = arith.constant 0 : index
    %32 = vector.load %arg8[%c0_26, %c0_27] : memref<32x1xf32, #tpu.memory_space<vmem>>, vector<32x1xf32>
    %33 = vector.broadcast %32 : vector<32x1xf32> to vector<32x512xf32>
    %34 = arith.addf %31, %33 : vector<32x512xf32>
    %c0_28 = arith.constant 0 : index
    %c0_29 = arith.constant 0 : index
    %c0_30 = arith.constant 0 : index
    %35 = vector.load %arg10[%c0_28, %c0_29, %c0_30] : memref<1x32x512xf32, #tpu.memory_space<vmem>>, vector<1x32x512xf32>
    %36 = vector.shape_cast %35 : vector<1x32x512xf32> to vector<32x512xf32>
    %37 = vector.shape_cast %34 : vector<32x512xf32> to vector<1x32x512xf32>
    tpu.vector_store %arg10[%c0_28, %c0_29, %c0_30], %37 {strides = array<i32>} : memref<1x32x512xf32, #tpu.memory_space<vmem>>, vector<1x32x512xf32>,
    return
  }
  func.func @transform_0(%arg0: i32, %arg1: i32) -> (i32, i32, i32) {
    %c0_i32 = arith.constant 0 : i32
    %c0_i32_0 = arith.constant 0 : i32
    return %arg0, %c0_i32, %arg1 : i32, i32, i32
  }
  func.func @transform_1(%arg0: i32, %arg1: i32) -> (i32, i32) {
    %c0_i32 = arith.constant 0 : i32
    %c0_i32_0 = arith.constant 0 : i32
    %c0_i32_1 = arith.constant 0 : i32
    return %c0_i32, %c0_i32_0 : i32, i32
  }
  func.func @transform_2(%arg0: i32, %arg1: i32) -> (i32, i32) {
    %c0_i32 = arith.constant 0 : i32
    %c0_i32_0 = arith.constant 0 : i32
    %c0_i32_1 = arith.constant 0 : i32
    return %c0_i32, %c0_i32_0 : i32, i32
  }
  func.func @transform_3(%arg0: i32, %arg1: i32) -> (i32, i32) {
    %c0_i32 = arith.constant 0 : i32
    %c0_i32_0 = arith.constant 0 : i32
    %c0_i32_1 = arith.constant 0 : i32
    return %c0_i32, %c0_i32_0 : i32, i32
  }
  func.func @transform_4(%arg0: i32, %arg1: i32) -> (i32, i32) {
    %c0_i32 = arith.constant 0 : i32
    %c0_i32_0 = arith.constant 0 : i32
    %c0_i32_1 = arith.constant 0 : i32
    return %c0_i32, %c0_i32_0 : i32, i32
  }
  func.func @transform_5(%arg0: i32, %arg1: i32) -> (i32, i32) {
    %c0_i32 = arith.constant 0 : i32
    %c0_i32_0 = arith.constant 0 : i32
    %c0_i32_1 = arith.constant 0 : i32
    return %c0_i32, %c0_i32_0 : i32, i32
  }
  func.func @transform_6(%arg0: i32, %arg1: i32) -> (i32, i32) {
    %c0_i32 = arith.constant 0 : i32
    %c0_i32_0 = arith.constant 0 : i32
    %c0_i32_1 = arith.constant 0 : i32
    return %c0_i32, %c0_i32_0 : i32, i32
  }
  func.func @transform_7(%arg0: i32, %arg1: i32) -> (i32, i32) {
    %c0_i32 = arith.constant 0 : i32
    %c0_i32_0 = arith.constant 0 : i32
    %c0_i32_1 = arith.constant 0 : i32
    return %c0_i32, %c0_i32_0 : i32, i32
  }
  func.func @transform_8(%arg0: i32, %arg1: i32) -> (i32, i32, i32) {
    %c0_i32 = arith.constant 0 : i32
    %c0_i32_0 = arith.constant 0 : i32
    return %arg0, %c0_i32, %arg1 : i32, i32, i32
  }
  func.func @transform_9(%arg0: i32, %arg1: i32) -> (i32, i32, i32) {
    %c0_i32 = arith.constant 0 : i32
    %c0_i32_0 = arith.constant 0 : i32
    return %arg0, %c0_i32, %arg1 : i32, i32, i32
  }
  func.func @transform_10(%arg0: i32, %arg1: i32) -> (i32, i32, i32) {
    %c0_i32 = arith.constant 0 : i32
    %c0_i32_0 = arith.constant 0 : i32
    return %arg0, %arg1, %c0_i32 : i32, i32, i32
  }
}

</mosaic_0001>

<bundles_post_ra>
// kernel: lfq_forward.1
= control target key start
LH: loop header
LB: loop body
LE: loop exit
PB: predicated region body
PF: predicated region fallthrough
CT: control target
= control target key end

     0   :  { %s3464_s0 = inlined_call_operand.vmem [shape: f32[2,32,1024], index: 0, kind: input, shape index: {}]   ;;  %s3465_s1 = inlined_call_operand.hbm [shape: f32[32,256], index: 1, kind: input, shape index: {}]   ;;  %s3466_s2 = inlined_call_operand.hbm [shape: f32[1,256], index: 2, kind: input, shape index: {}]   ;;  %s3467_s3 = inlined_call_operand.hbm [shape: f32[8,32], index: 3, kind: input, shape index: {}]   ;;  %s3468_s4 = inlined_call_operand.vmem [shape: f32[8,1], index: 4, kind: input, shape index: {}]   ;;  %s3469_s5 = inlined_call_operand.vmem [shape: f32[32,8], index: 5, kind: input, shape index: {}]   ;;  %s3470_s6 = inlined_call_operand.vmem [shape: f32[32,1], index: 6, kind: input, shape index: {}]   ;;  %s3471_s7 = inlined_call_operand.vmem [shape: s32[8,1], index: 7, kind: input, shape index: {}]   ;;  %s3472_s8 = inlined_call_operand.vmem [shape: f32[2,32,1024], index: 8, kind: output, shape index: {0}]   ;;  %s3473_s9 = inlined_call_operand.vmem [shape: s32[2,1,1024], index: 9, kind: output, shape index: {1}]   ;;  %s3474_s10 = inlined_call_operand.vmem [shape: f32[2,1024,256], index: 10, kind: output, shape index: {2}]  }
   0x1   :  { %3483 = sst [smem:[#allocation16_spill]] %s3466_s2 }
   0x2   :  { %3484 = sst [smem:[#allocation17_spill]] %s3469_s5 }
   0x3   :  { %3485 = sst [smem:[#allocation18_spill]] %s3472_s8 }
   0x4   :  { %3486 = sst [smem:[#allocation19_spill]] %s3473_s9 }
   0x5   :  { %3487 = sst [smem:[#allocation20_spill]] %s3474_s10 }
   0x6   :  { %16 = vsyncpa [#allocation4], 0 }
   0x7   :  { %17 = vsyncpa [#allocation6], 0  ;;  %s2607_s13 = smov 0   ;;  %s2609_s14 = smov 0  }
   0x8   :  { %s2611_s15 = smov 0   ;;  %s2613_s16 = smov 0  }
   0x9   :  { %s2615_s17 = smov 0   ;;  %s2617_s18 = smov 0  }
   0xa   :  { %s2619_s19 = smov 0  }
   0xb LB: > { %3488 = sst [smem:[#allocation11_spill]] %s2529_s16  ;;  %s2169_s20 = sadd.s32 4294967295, %s2541_s19   ;;  %s2541_s19 = sphi %s2619_s19, %s23_s19   ;;  %s2537_s18 = sphi %s2617_s18, %s3519_s18   ;;  %s2533_s17 = sphi %s2615_s17, %s3518_s17   ;;  %s2529_s16 = sphi %s2613_s16, %s3517_s16   ;;  %s2525_s15 = sphi %s2611_s15, %s3516_s15   ;;  %s2521_s14 = sphi %s2609_s14, %s3515_s14   ;;  %s2517_s13 = sphi %s2607_s13, %s3514_s13  }
   0xc   : > { %s32_s21 = sadd.s32 1, %s2533_s17  ;;  %s35_s22 = sadd.s32 1, %s2537_s18 }
   0xd   : > { %p33_p0 = scmp.ge.s32.totalorder %s32_s21, 2  ;;  %s44_s23 = sadd.s32 1, %s2521_s14 }
   0xe   : > { %p51_p1 = scmp.ne.s32.totalorder %s2521_s14, %s2517_s13  ;;  %p52_p2 = scmp.eq.s32.totalorder %s2541_s19, 0 }
   0xf   : > { %s3521_s21 = smov (%p33_p0, %s32_s21), 0  ;;  %s3523_s22 = smov (!%p33_p0, %s35_s22), %s2537_s18 }
  0x10   : > { %3489 = sst [smem:[#allocation12_spill]] %s3521_s21  ;;  %s40_s24 = ssub.s32 %s2533_s17, %s3521_s21 }
  0x11   : > { %p37_p3 = scmp.ge.s32.totalorder %s3523_s22, 2  ;;  %p230_p4 = scmp.eq.s32.totalorder %s2169_s20, 3 }
  0x12   : > { %p2654_p5 = por %p52_p2, %p51_p1  ;;  %p2171_p6 = scmp.ge.s32.totalorder %s2541_s19, 1 }
  0x13   : > { %s3525_s22 = smov (%p37_p3, %s3523_s22), 0  ;;  %p2661_p7 = por %p230_p4, %p51_p1 }
  0x14   : > { %s3490_s25 = scalar_select %p2654_p5, 1, 0 }
  0x15   : > { %3491 = sst [smem:[#allocation13_spill]] %s3525_s22  ;;  %p299_p8 = scmp.lt.s32.totalorder %s2541_s19, 5 }
  0x16   : > { %s3492_s26 = scalar_select %p2661_p7, 1, 0 }
  0x17   : > { %s39_s27 = ssub.s32 %s2537_s18, %s3525_s22  ;;  %p2668_p9 = pnand %p2171_p6, %p299_p8 }
  0x18   : > { %3493 = sst [smem:[#allocation14_spill]] %s3492_s26  ;;  %s41_s28 = sor.u32 %s40_s24, %s39_s27 }
  0x19   : > { %s3494_s29 = scalar_select %p2668_p9, 1, 0 }
  0x1a   : > { %p42_p10 = scmp.eq.s32.totalorder %s41_s28, 0  ;;  %p2672_p11 = scmp.eq.s32.totalorder %s2169_s20, 0 }
  0x1b   : > { %p2312_p12 = pneg %p2668_p9  ;;  %s2543_s24 = smov [#allocation5]  }
  0x1c   : > { %s3495_s30 = scalar_select %p2672_p11, 1, 0 }
  0x1d   : > { %s2679_s11 = scalar_select %p42_p10, %s2521_s14, %s44_s23  }
  0x1e   : > { %p2683_p13 = pnand %p2672_p11, %p2312_p12  ;;  %s325_s27 = sshll.u32 %s2543_s24, 4  ;;  %s326_s27 = int_to_ptr.vmem [resolvable:$true] %s325_s27 }
  0x1f   : > { %3496 = sst [smem:[#allocation15_spill]] %s2679_s11  ;;  %s3498_s2 = sld [smem:[#allocation16_spill]] }
  0x20   : > { %p2695_p1 = pneg %p2683_p13 }
  0x25   : > { %s2395_s20 = scalar_lea.hbm %s3498_s2, 32 }
  0x26   : > { %p2396_p0 = scmp.ne.s32.totalorder %s3498_s2, %s2395_s20  ;;  %p2402_p4 = scmp.lt.u32.totalorder %s2395_s20, %s3498_s2 }
  0x28   : > { %p2398_p2 = pnand %p2695_p1, %p2396_p0 }
  0x2a   : > { %p2399_p3 = pneg %p2398_p2 }
  0x2c   : > { %p2404_p6 = pnand %p2402_p4, %p2399_p3 }
  0x2e   : > { %2407 = shalt.err (!%p2404_p6)
}
  0x2f   : > { %s2408_s22 = scalar_lea.vmem %s326_s27, 32  ;;  %p2416_p7 = scmp.lt.s32.totalorder %s326_s27, %s326_s27 }
  0x30   : > { %p2409_p8 = scmp.ne.s32.totalorder %s326_s27, %s2408_s22  ;;  %p2417_p11 = scmp.lt.s32.totalorder %s2408_s22, %s2408_s22 }
  0x32   : > { %p2411_p10 = pnand %p2409_p8, %p2695_p1  ;;  %p2418_p9 = por %p2417_p11, %p2416_p7 }
  0x34   : > { %p2412_p12 = pneg %p2411_p10 }
  0x36   : > { %p2419_p5 = pnand %p2418_p9, %p2412_p12 }
  0x38   : > { %2422 = shalt.err (!%p2419_p5)
}
  0x39   : > { %2318 = dma.hbm_to_vmem [thread:$0]  (!%p2683_p13), %s3498_s2, 32, %s326_s27, [#allocation6]  }
  0x3a   : > { %s2544_s11 = smov [#allocation3]   ;;  %s2423_s26 = scalar_lea.hbm %s3465_s1, 1024 }
  0x3b   : > { %s311_s28 = sshll.u32 %s2544_s11, 4  ;;  %p2424_p7 = scmp.ne.s32.totalorder %s3465_s1, %s2423_s26  ;;  %s312_s28 = int_to_ptr.vmem [resolvable:$true] %s311_s28 }
  0x3c   : > { %p2430_p11 = scmp.lt.u32.totalorder %s2423_s26, %s3465_s1 }
  0x3d   : > { %p2426_p5 = pnand %p2424_p7, %p2695_p1 }
  0x3f   : > { %p2427_p9 = pneg %p2426_p5 }
  0x41   : > { %p2432_p0 = pnand %p2430_p11, %p2427_p9 }
  0x43   : > { %2435 = shalt.err (!%p2432_p0)
}
  0x44   : > { %s2436_s27 = scalar_lea.vmem %s312_s28, 1024  ;;  %p2444_p6 = scmp.lt.s32.totalorder %s312_s28, %s312_s28 }
  0x45   : > { %p2437_p2 = scmp.ne.s32.totalorder %s312_s28, %s2436_s27  ;;  %p2445_p8 = scmp.lt.s32.totalorder %s2436_s27, %s2436_s27 }
  0x47   : > { %p2439_p3 = pnand %p2437_p2, %p2695_p1  ;;  %p2446_p10 = por %p2445_p8, %p2444_p6 }
  0x49   : > { %p2440_p4 = pneg %p2439_p3 }
  0x4b   : > { %p2447_p12 = pnand %p2446_p10, %p2440_p4 }
  0x4d   : > { %2450 = shalt.err (!%p2447_p12)
}
  0x4e   : > { %s2545_s5 = smov 256   ;;  %s2546_s9 = smov 16  }
  0x4f   : > { %2315 = dma.hbm_to_vmem [thread:$0]  (!%p2683_p13), %s3465_s1, 1024, %s312_s28, [#allocation4], %s2545_s5, %s2545_s5, %s2546_s9  }
  0x50   : > { %s2547_s8 = smov [#allocation7]   ;;  %s2451_s24 = scalar_lea.hbm %s3467_s3, 128 }
  0x51   : > { %s336_s21 = sshll.u32 %s2547_s8, 4  ;;  %p2452_p7 = scmp.ne.s32.totalorder %s3467_s3, %s2451_s24  ;;  %s337_s21 = int_to_ptr.vmem [resolvable:$true] %s336_s21 }
  0x52   : > { %p2458_p11 = scmp.lt.u32.totalorder %s2451_s24, %s3467_s3 }
  0x53   : > { %p2454_p5 = pnand %p2452_p7, %p2695_p1 }
  0x55   : > { %p2455_p9 = pneg %p2454_p5 }
  0x57   : > { %p2460_p0 = pnand %p2458_p11, %p2455_p9 }
  0x59   : > { %2463 = shalt.err (!%p2460_p0)
}
  0x5a   : > { %s2464_s28 = scalar_lea.vmem %s337_s21, 128  ;;  %p2472_p6 = scmp.lt.s32.totalorder %s337_s21, %s337_s21 }
  0x5b   : > { %p2465_p2 = scmp.ne.s32.totalorder %s337_s21, %s2464_s28  ;;  %p2473_p8 = scmp.lt.s32.totalorder %s2464_s28, %s2464_s28 }
  0x5d   : > { %p2467_p3 = pnand %p2465_p2, %p2695_p1  ;;  %p2474_p10 = por %p2473_p8, %p2472_p6 }
  0x5f   : > { %p2468_p4 = pneg %p2467_p3 }
  0x61   : > { %p2475_p12 = pnand %p2474_p10, %p2468_p4 }
  0x63   : > { %2478 = shalt.err (!%p2475_p12)
}
  0x64   : > { %2321 = dma.hbm_to_vmem [thread:$0]  (!%p2683_p13), %s3467_s3, 128, %s337_s21, [#allocation6]  }
  0x65   : > { %p2175_p7 = scmp.ge.s32.totalorder %s2541_s19, 4 }
  0x66   : > { %p3500_p5 = scmp.ne.s32.totalorder (!%p2175_p7), %s3490_s25, 0 }
  0x67   : > { %355 = sbr.rel (%p2175_p7) target bundleno = 125 (0x7d), region = 44 }
  0x6e   : > { %358 = sbr.rel (!%p3500_p5) target bundleno = 125 (0x7d), region = 48  ;;  %s360_s2 = sand.u32 (%p3500_p5), 1, %s2521_s14  }
  0x6f   : > { %s2177_s16 = sshll.u32 (%p3500_p5), %s2533_s17, 2  ;;  %s2176_s23 = sshll.u32 (%p3500_p5), %s360_s2, 7 }
  0x70   : > { %s2178_s10 = sshll.u32 (%p3500_p5), %s2537_s18, 5  ;;  %s362_s25 = scalar_lea.vmem (%p3500_p5), [#allocation2], %s2176_s23 }
  0x71   : > { %s365_s26 = sadd.s32 (%p3500_p5), %s2178_s10, %s2177_s16 }
  0x72   : > { %s2179_s8 = sshll.u32 (%p3500_p5), %s365_s26, 3 }
  0x73   : > { %s2756_s20 = scalar_lea.vmem (%p3500_p5), %s3464_s0, %s2179_s8 }
  0x74   : > { %v380_v0 = vld [vmem:[%s2756_s20] sm:$0xff] (%p3500_p5)  ;;  %v382_v1 = vld [vmem:[%s2756_s20 + $0x8] sm:$0xff] (%p3500_p5)  ;;  %v384_v2 = vld [vmem:[%s2756_s20 + $0x10] sm:$0xff] (%p3500_p5) }
  0x75   : > { %381 = vst [vmem:[%s362_s25] sm:$0xff] %v380_v0  ;;  %383 = vst [vmem:[%s362_s25 + $0x8] sm:$0xff] %v382_v1  ;;  %v386_v3 = vld [vmem:[%s2756_s20 + $0x18] sm:$0xff]  ;;  %v388_v4 = vld [vmem:[%s2756_s20 + $0x40] sm:$0xff] }
  0x76   : > { %385 = vst [vmem:[%s362_s25 + $0x10] sm:$0xff] %v384_v2  ;;  %v390_v5 = vld [vmem:[%s2756_s20 + $0x48] sm:$0xff]  ;;  %387 = vst [vmem:[%s362_s25 + $0x18] sm:$0xff] %v386_v3  ;;  %v392_v6 = vld [vmem:[%s2756_s20 + $0x50] sm:$0xff] }
  0x77   : > { %389 = vst [vmem:[%s362_s25 + $0x20] sm:$0xff] %v388_v4  ;;  %391 = vst [vmem:[%s362_s25 + $0x28] sm:$0xff] %v390_v5  ;;  %v394_v7 = vld [vmem:[%s2756_s20 + $0x58] sm:$0xff]  ;;  %v396_v8 = vld [vmem:[%s2756_s20 + $0x80] sm:$0xff] }
  0x78   : > { %393 = vst [vmem:[%s362_s25 + $0x30] sm:$0xff] %v392_v6  ;;  %395 = vst [vmem:[%s362_s25 + $0x38] sm:$0xff] %v394_v7  ;;  %v398_v9 = vld [vmem:[%s2756_s20 + $0x88] sm:$0xff]  ;;  %v400_v10 = vld [vmem:[%s2756_s20 + $0x90] sm:$0xff] }
  0x79   : > { %397 = vst [vmem:[%s362_s25 + $0x40] sm:$0xff] %v396_v8  ;;  %v402_v11 = vld [vmem:[%s2756_s20 + $0x98] sm:$0xff]  ;;  %399 = vst [vmem:[%s362_s25 + $0x48] sm:$0xff] %v398_v9  ;;  %v404_v12 = vld [vmem:[%s2756_s20 + $0xc0] sm:$0xff] }
  0x7a   : > { %401 = vst [vmem:[%s362_s25 + $0x50] sm:$0xff] %v400_v10  ;;  %403 = vst [vmem:[%s362_s25 + $0x58] sm:$0xff] %v402_v11  ;;  %v406_v13 = vld [vmem:[%s2756_s20 + $0xc8] sm:$0xff]  ;;  %v408_v14 = vld [vmem:[%s2756_s20 + $0xd0] sm:$0xff] }
  0x7b   : > { %405 = vst [vmem:[%s362_s25 + $0x60] sm:$0xff] %v404_v12  ;;  %407 = vst [vmem:[%s362_s25 + $0x68] sm:$0xff] %v406_v13  ;;  %v410_v15 = vld [vmem:[%s2756_s20 + $0xd8] sm:$0xff] }
  0x7c   : > { %409 = vst [vmem:[%s362_s25 + $0x70] sm:$0xff] %v408_v14  ;;  %411 = vst [vmem:[%s362_s25 + $0x78] sm:$0xff] %v410_v15 }
  0x7d PF: > { %p3501_p13 = scmp.ne.s32.totalorder %s3494_s29, 0 }
  0x7e   : > { %s423_s21 = sand.u32 (!%p3501_p13), 1, %s2517_s13   ;;  %p3502_p1 = scmp.ne.s32.totalorder (!%p3501_p13), %s3495_s30, 0 }
  0x7f   : > { %420 = sbr.rel (%p3501_p13) target bundleno = 866 (0x362), region = 71  ;;  %s2777_s24 = sshll.u32 (!%p3501_p13), %s423_s21, 7 }
  0x80   : > { %s2780_s22 = scalar_lea.vmem (!%p3501_p13), [#allocation2], %s2777_s24 }
  0x86   : > { %2508 = dma.done.wait (%p3502_p1), [#allocation4], 1024  }
  0x87   : > { %2510 = vsyncadd (%p3502_p1), [#allocation4], 4294966272 }
  0x88   : > { %2512 = dma.done.wait (%p3502_p1), [#allocation6], 160  }
  0x89   : > { %2514 = vsyncadd (%p3502_p1), [#allocation6], 4294967136  ;;  %v2791_v16 = vld [vmem:[%s2780_s22 + $0x10] sm:$0xff]  ;;  %v2806_v21 = vld [vmem:[%s2780_s22 + $0x18] sm:$0xff]  ;;  %v2548_v49 = vmov 0.0   ;;  %vm675_vm0 = vcmask 261120  }
  0x8a   : > { %v2794_v17 = vld [vmem:[%s2780_s22 + $0x30] sm:$0xff]  ;;  %591 = vxpose.xlu0.b32.start [1/4] (short) %v2791_v16, 128  ;;  %623 = vxpose.xlu1.b32.start [1/4] (short) %v2806_v21, 128  ;;  %v2812_v23 = vld [vmem:[%s2780_s22] sm:$0xff]  ;;  %v2818_v25 = vld [vmem:[%s2780_s22 + $0x38] sm:$0xff]  ;;  %s3503_s9 = sld [smem:[#allocation11_spill]]  ;;  %s2188_s2 = sshll.u32 %s2525_s15, 6  ;;  %vm1698_vm3 = vcmask 64512  }
  0x8b   : > { %v2290_v18 = vpack.c.bf16 %v2794_v17, %v2791_v16  ;;  %v2800_v19 = vld [vmem:[%s2780_s22 + $0x50] sm:$0xff]  ;;  %v2815_v24 = vld [vmem:[%s2780_s22 + $0x20] sm:$0xff]  ;;  %v2288_v27 = vpack.c.bf16 %v2818_v25, %v2806_v21  ;;  %v2825_v28 = vld [vmem:[%s2780_s22 + $0x58] sm:$0xff]  ;;  %1160 = vmatprep.mubr.f32.mxu1 %v2548_v49  ;;  %932 = vmatprep.mubr.f32.mxu0 %v2548_v49  ;;  %p503_p11 = scmp.lt.s32.totalorder %s2188_s2, 127  ;;  %s3504_s11 = sld [smem:[#allocation20_spill]] }
  0x8c   : > { %v2803_v20 = vld [vmem:[%s2780_s22 + $0x70] sm:$0xff]  ;;  %v2282_v26 = vpack.c.bf16 %v2815_v24, %v2812_v23  ;;  %v2828_v29 = vld [vmem:[%s2780_s22 + $0x78] sm:$0xff]  ;;  %v520_v31 = vld [vmem:[%s2780_s22 + $0x48] sm:$0xff]  ;;  %s3505_s5 = sld [smem:[#allocation17_spill]]  ;;  %s3305_s12 = sshll.u32 %s2525_s15, 2 }
  0x8d   : > { %v2294_v22 = vpack.c.bf16 %v2803_v20, %v2800_v19  ;;  %v2292_v30 = vpack.c.bf16 %v2828_v29, %v2825_v28  ;;  %v524_v32 = vld [vmem:[%s2780_s22 + $0x68] sm:$0xff]  ;;  %v658_v35 = vld [vmem:[#allocation3 + $0x18] sm:$0xff]  ;;  %v655_v37 = vld [vmem:[#allocation3] sm:$0xff]  ;;  %s3529_s2 = smov (!%p503_p11, %s2188_s2), 127  ;;  %p494_p0 = scmp.lt.s32.totalorder %s3305_s12, 7 }
  0x8e   : > { %592 = vxpose.xlu0.b32.cont [2/4] (short) %v2794_v17, 128  ;;  %624 = vxpose.xlu1.b32.cont [2/4] (short) %v2818_v25, 128  ;;  %v2284_v33 = vpack.c.bf16 %v524_v32, %v520_v31  ;;  %v656_v34 = vld [vmem:[#allocation3 + $0x8] sm:$0xff]  ;;  %v657_v38 = vld [vmem:[#allocation3 + $0x10] sm:$0xff]  ;;  %v662_v43 = vld [vmem:[#allocation3 + $0x38] sm:$0xff]  ;;  %s2189_s16 = sshll.u32 %s3529_s2, 1  ;;  %s3402_s29 = scalar_lea.vmem [#allocation8], %s2777_s24 }
  0x8f   : > { %v2272_v36 = vpack.c.bf16 %v658_v35, %v656_v34  ;;  %v2274_v39 = vpack.c.bf16 %v657_v38, %v655_v37  ;;  %v512_v40 = vld [vmem:[%s2780_s22 + $0x8] sm:$0xff]  ;;  %v659_v46 = vld [vmem:[#allocation3 + $0x20] sm:$0xff]  ;;  %v661_v47 = vld [vmem:[#allocation3 + $0x30] sm:$0xff]  ;;  %v2549_v34 = vmov 0   ;;  %s495_s15 = scalar_select %p494_p0, %s3305_s12, 7 }
  0x90   : > { %v516_v41 = vld [vmem:[%s2780_s22 + $0x28] sm:$0xff]  ;;  %v2278_v48 = vpack.c.bf16 %v661_v47, %v659_v46  ;;  %v519_v50 = vld [vmem:[%s2780_s22 + $0x40] sm:$0xff]  ;;  %v1677_v38 = vld [vmem:[%s3470_s6 + $0x18] sm:$0xff]  ;;  %p492_p9 = scmp.lt.s32.totalorder %s3503_s9, 1  ;;  %s3507_s24 = sld [smem:[#allocation14_spill]] }
  0x91   : > { %2296 = vmatprep.subr.bf16.mxu1 %v2272_v36  ;;  %2273 = vmatprep.subr.bf16.mxu0 %v2272_v36  ;;  %v660_v42 = vld [vmem:[#allocation3 + $0x28] sm:$0xff]  ;;  %v2280_v44 = vpack.c.bf16 %v516_v41, %v512_v40  ;;  %v523_v51 = vld [vmem:[%s2780_s22 + $0x60] sm:$0xff]  ;;  %s3506_s22 = sld [smem:[#allocation19_spill]] }
  0x92   : > { %593 = vxpose.xlu0.b32.cont [3/4] (short) %v2800_v19, 128  ;;  %625 = vxpose.xlu1.b32.cont [3/4] (short) %v2825_v28, 128  ;;  %v2276_v45 = vpack.c.bf16 %v662_v43, %v660_v42  ;;  %v2286_v0 = vpack.c.bf16 %v523_v51, %v519_v50  ;;  %v1609_v37 = vld [vmem:[%s3471_s7] sm:$0xff]  ;;  %s3527_s9 = smov (!%p492_p9, %s3503_s9), 1 }
  0x93   : > { %2298 = vmatpush1.bf16.msra.mxu1 %v2274_v39  ;;  %2275 = vmatpush1.bf16.msra.mxu0 %v2274_v39  ;;  %s2190_s23 = sshll.u32 %s3527_s9, 8 }
  0x94   : > { %2297 = vmatprep.subr.bf16.mxu1 %v2276_v45  ;;  %2277 = vmatprep.subr.bf16.mxu0 %v2276_v45  ;;  %s507_s10 = sadd.s32 %s2190_s23, %s2189_s16 }
  0x95   : > { %s2191_s26 = sshll.u32 %s507_s10, 3 }
  0x96   : > { %594 = vxpose.xlu0.b32.end [4/4] (short) %v2803_v20, 128  ;;  %626 = vxpose.xlu1.b32.end [4/4] (short) %v2828_v29, 128  ;;  %s3074_s20 = scalar_lea.vmem %s3504_s11, %s2191_s26  ;;  %s2187_s11 = sshll.u32 %s3527_s9, 3 }
  0x97   : > { %2299 = vmatpush1.bf16.msra.mxu1 %v2278_v48  ;;  %2279 = vmatpush1.bf16.msra.mxu0 %v2278_v48  ;;  %s497_s25 = sadd.s32 %s2187_s11, %s495_s15  ;;  %p3508_p2 = scmp.ne.s32.totalorder %s3507_s24, 0 }
  0x98   : > { %2281 = vmatprep.subr.bf16.mxu1 %v2280_v44  ;;  %s498_s13 = scalar_lea.vmem %s3506_s22, %s497_s25  ;;  %s3510_s23 = sld [smem:[#allocation18_spill]] (%p3508_p2) }
  0xc7   : > { %527 = vxpose.xlu0.b32.start [1/4] (short) %v2812_v23, 128  ;;  %559 = vxpose.xlu1.b32.start [1/4] (short) %v512_v40, 128 }
  0xcb   : > { %528 = vxpose.xlu0.b32.cont [2/4] (short) %v2815_v24, 128  ;;  %560 = vxpose.xlu1.b32.cont [2/4] (short) %v516_v41, 128 }
  0xcf   : > { %529 = vxpose.xlu0.b32.cont [3/4] (short) %v519_v50, 128  ;;  %561 = vxpose.xlu1.b32.cont [3/4] (short) %v520_v31, 128 }
  0xd3   : > { %530 = vxpose.xlu0.b32.end [4/4] (short) %v523_v51, 128  ;;  %562 = vxpose.xlu1.b32.end [4/4] (short) %v524_v32, 128 }
  0xf1   : > { %2394 = vset.pattern.permute.xlu1 %v2549_v34 }
  0xfc   : > { %2393 = vset.pattern.permute.xlu0 %v2549_v34 }
 0x10a   : > { %v2848_v52 = vpop.trf.xlu0  ;;  %v639_v53 = vpop.trf.xlu1 }
 0x10e   : > { %v2850_v54 = vpop.trf.xlu0  ;;  %v640_v55 = vpop.trf.xlu1 }
 0x112   : > { %v2852_v56 = vpop.trf.xlu0  ;;  %v641_v58 = vpop.trf.xlu1 }
 0x116   : > { %v2854_v57 = vpop.trf.xlu0  ;;  %v2858_v60 = vpop.trf.xlu1 }
 0x11a   : > { %v2856_v59 = vpop.trf.xlu0  ;;  %v2862_v63 = vpop.trf.xlu1 }
 0x11e   : > { %v2860_v61 = vpop.trf.xlu0  ;;  %v2871_v2 = vpop.trf.xlu1 }
 0x121   : > { %1611 = vperm.xlu1 %2394, %v1609_v37  }
 0x122   : > { %v613_v62 = vpop.trf.xlu0  ;;  %v2878_v5 = vpop.trf.xlu1 }
 0x123   : > { %2230 = vmatmul.mubr.msk.f32.vlgmr.msra.gmra.mrb[0].mxu1 %vm675_vm0, %v613_v62  ;;  %v1445_v62 = vld [vmem:[#allocation7] sm:$0xff] }
 0x124   : > { %1166 = vmatprep.mubr.f32.mxu1 %v2548_v49  ;;  %2283 = vmatpush1.bf16.msra.mxu1 %v2282_v26 }
 0x125   : > { %2285 = vmatprep.subr.bf16.mxu1 %v2284_v33  ;;  %v1446_v33 = vld [vmem:[%s3468_s4] sm:$0xff] }
 0x126   : > { %v614_v1 = vpop.trf.xlu0  ;;  %v2884_v7 = vpop.trf.xlu1 }
 0x127   : > { %2231 = vmatmul.mubr.msk.f32.gmra.mrb[2].mxu1 %vm675_vm0, %v614_v1 }
 0x128   : > { %1172 = vmatprep.mubr.f32.mxu1 %v2548_v49  ;;  %2287 = vmatpush1.bf16.msra.mxu1 %v2286_v0 }
 0x129   : > { %2289 = vmatprep.subr.bf16.mxu1 %v2288_v27 }
 0x12a   : > { %v615_v3 = vpop.trf.xlu0  ;;  %v2888_v10 = vpop.trf.xlu1 }
 0x12b   : > { %2232 = vmatmul.mubr.msk.f32.gmra.mrb[4].mxu1 %vm675_vm0, %v615_v3 }
 0x12c   : > { %1178 = vmatprep.mubr.f32.mxu1 %v2548_v49  ;;  %1449 = vperm.xlu0 %2393, %v1446_v33  }
 0x12e   : > { %v616_v4 = vpop.trf.xlu0  ;;  %v2894_v12 = vpop.trf.xlu1 }
 0x12f   : > { %2233 = vmatmul.mubr.msk.f32.gmra.mrb[6].mxu1 %vm675_vm0, %v616_v4 }
 0x130   : > { %1184 = vmatprep.mubr.f32.mxu1 %v2548_v49  ;;  %1695 = vperm.xlu0 %2393, %v1677_v38  }
 0x132   : > { %v617_v6 = vpop.trf.xlu0  ;;  %v2898_v15 = vpop.trf.xlu1 }
 0x133   : > { %2234 = vmatmul.mubr.msk.f32.gmra.mrb[8].mxu1 %vm675_vm0, %v617_v6 }
 0x134   : > { %1190 = vmatprep.mubr.f32.mxu1 %v2548_v49 }
 0x136   : > { %v618_v8 = vpop.trf.xlu0  ;;  %v2906_v23 = vpop.trf.xlu1 }
 0x137   : > { %2235 = vmatmul.mubr.msk.f32.gmra.mrb[10].mxu1 %vm675_vm0, %v618_v8 }
 0x138   : > { %1196 = vmatprep.mubr.f32.mxu1 %v2548_v49 }
 0x13a   : > { %v619_v9 = vpop.trf.xlu0  ;;  %v2912_v26 = vpop.trf.xlu1 }
 0x13b   : > { %2236 = vmatmul.mubr.msk.f32.gmra.mrb[12].mxu1 %vm675_vm0, %v619_v9 }
 0x13c   : > { %1202 = vmatprep.mubr.f32.mxu1 %v2548_v49 }
 0x13e   : > { %v620_v11 = vpop.trf.xlu0  ;;  %v2923_v31 = vpop.trf.xlu1 }
 0x13f   : > { %2237 = vmatmul.mubr.msk.f32.gmra.mrb[14].mxu1 %vm675_vm0, %v620_v11 }
 0x140   : > { %1208 = vmatprep.mubr.f32.mxu1 %v2548_v49 }
 0x142   : > { %v621_v13 = vpop.trf.xlu0  ;;  %v653_v36 = vpop.trf.xlu1 }
 0x143   : > { %2238 = vmatmul.mubr.msk.f32.gmra.mrb[16].mxu1 %vm675_vm0, %v621_v13 }
 0x144   : > { %1214 = vmatprep.mubr.f32.mxu1 %v2548_v49 }
 0x146   : > { %v622_v14 = vpop.trf.xlu0  ;;  %v654_v40 = vpop.trf.xlu1 }
 0x147   : > { %2239 = vmatmul.mubr.msk.f32.gmra.mrb[18].mxu1 %vm675_vm0, %v622_v14 }
 0x148   : > { %1220 = vmatprep.mubr.f32.mxu1 %v2548_v49 }
 0x14a   : > { %v543_v21 = vpop.trf.xlu0  ;;  %v575_v43 = vpop.trf.xlu1 }
 0x14b   : > { %2192 = vmatmul.mubr.msk.f32.vlgmr.msra.gmra.mrb[0].mxu0 %vm675_vm0, %v543_v21  ;;  %2240 = vmatmul.mubr.msk.f32.gmra.mrb[20].mxu1 %vm675_vm0, %v639_v53 }
 0x14c   : > { %938 = vmatprep.mubr.f32.mxu0 %v2548_v49  ;;  %1226 = vmatprep.mubr.f32.mxu1 %v2548_v49 }
 0x14e   : > { %v544_v24 = vpop.trf.xlu0  ;;  %v576_v45 = vpop.trf.xlu1 }
 0x14f   : > { %2193 = vmatmul.mubr.msk.f32.gmra.mrb[2].mxu0 %vm675_vm0, %v544_v24  ;;  %2241 = vmatmul.mubr.msk.f32.gmra.mrb[22].mxu1 %vm675_vm0, %v640_v55 }
 0x150   : > { %944 = vmatprep.mubr.f32.mxu0 %v2548_v49  ;;  %1232 = vmatprep.mubr.f32.mxu1 %v2548_v49 }
 0x152   : > { %v545_v25 = vpop.trf.xlu0  ;;  %v577_v48 = vpop.trf.xlu1 }
 0x153   : > { %2194 = vmatmul.mubr.msk.f32.gmra.mrb[4].mxu0 %vm675_vm0, %v545_v25  ;;  %2242 = vmatmul.mubr.msk.f32.gmra.mrb[24].mxu1 %vm675_vm0, %v641_v58 }
 0x154   : > { %950 = vmatprep.mubr.f32.mxu0 %v2548_v49  ;;  %1238 = vmatprep.mubr.f32.mxu1 %v2548_v49 }
 0x156   : > { %v546_v27 = vpop.trf.xlu0  ;;  %v578_v51 = vpop.trf.xlu1 }
 0x157   : > { %2195 = vmatmul.mubr.msk.f32.gmra.mrb[6].mxu0 %vm675_vm0, %v546_v27  ;;  %2243 = vmatmul.mubr.msk.f32.gmra.mrb[26].mxu1 %vm675_vm0, %v2858_v60 }
 0x158   : > { %956 = vmatprep.mubr.f32.mxu0 %v2548_v49  ;;  %1244 = vmatprep.mubr.f32.mxu1 %v2548_v49 }
 0x15a   : > { %v547_v32 = vpop.trf.xlu0  ;;  %v579_v58 = vpop.trf.xlu1 }
 0x15b   : > { %2196 = vmatmul.mubr.msk.f32.gmra.mrb[8].mxu0 %vm675_vm0, %v547_v32  ;;  %2244 = vmatmul.mubr.msk.f32.gmra.mrb[28].mxu1 %vm675_vm0, %v2862_v63 }
 0x15c   : > { %962 = vmatprep.mubr.f32.mxu0 %v2548_v49  ;;  %1250 = vmatprep.mubr.f32.mxu1 %v2548_v49 }
 0x15e   : > { %v548_v35 = vpop.trf.xlu0  ;;  %v580_v63 = vpop.trf.xlu1 }
 0x15f   : > { %2197 = vmatmul.mubr.msk.f32.gmra.mrb[10].mxu0 %vm675_vm0, %v548_v35  ;;  %2245 = vmatmul.mubr.msk.f32.gmra.mrb[30].mxu1 %vm675_vm0, %v2871_v2 }
 0x160   : > { %968 = vmatprep.mubr.f32.mxu0 %v2548_v49  ;;  %1256 = vmatprep.mubr.f32.mxu1 %v2548_v49 }
 0x162   : > { %v549_v39 = vpop.trf.xlu0  ;;  %v581_v0 = vpop.trf.xlu1 }
 0x163   : > { %2198 = vmatmul.mubr.msk.f32.gmra.mrb[12].mxu0 %vm675_vm0, %v549_v39  ;;  %2246 = vmatmul.mubr.msk.f32.gmra.mrb[32].mxu1 %vm675_vm0, %v2878_v5 }
 0x164   : > { %974 = vmatprep.mubr.f32.mxu0 %v2548_v49  ;;  %1262 = vmatprep.mubr.f32.mxu1 %v2548_v49 }
 0x166   : > { %v550_v41 = vpop.trf.xlu0  ;;  %v582_v16 = vpop.trf.xlu1 }
 0x167   : > { %2199 = vmatmul.mubr.msk.f32.gmra.mrb[14].mxu0 %vm675_vm0, %v550_v41  ;;  %2247 = vmatmul.mubr.msk.f32.gmra.mrb[34].mxu1 %vm675_vm0, %v2884_v7 }
 0x168   : > { %980 = vmatprep.mubr.f32.mxu0 %v2548_v49  ;;  %1268 = vmatprep.mubr.f32.mxu1 %v2548_v49 }
 0x16a   : > { %v551_v42 = vpop.trf.xlu0  ;;  %v583_v17 = vpop.trf.xlu1 }
 0x16b   : > { %2200 = vmatmul.mubr.msk.f32.gmra.mrb[16].mxu0 %vm675_vm0, %v551_v42  ;;  %2248 = vmatmul.mubr.msk.f32.gmra.mrb[36].mxu1 %vm675_vm0, %v2888_v10 }
 0x16c   : > { %986 = vmatprep.mubr.f32.mxu0 %v2548_v49  ;;  %1274 = vmatprep.mubr.f32.mxu1 %v2548_v49 }
 0x16e   : > { %v552_v44 = vpop.trf.xlu0 }
 0x16f   : > { %2201 = vmatmul.mubr.msk.f32.gmra.mrb[18].mxu0 %vm675_vm0, %v552_v44  ;;  %2249 = vmatmul.mubr.msk.f32.gmra.mrb[38].mxu1 %vm675_vm0, %v2894_v12 }
 0x170   : > { %992 = vmatprep.mubr.f32.mxu0 %v2548_v49  ;;  %1280 = vmatprep.mubr.f32.mxu1 %v2548_v49 }
 0x172   : > { %v553_v46 = vpop.trf.xlu0 }
 0x173   : > { %2202 = vmatmul.mubr.msk.f32.gmra.mrb[20].mxu0 %vm675_vm0, %v553_v46  ;;  %2250 = vmatmul.mubr.msk.f32.gmra.mrb[40].mxu1 %vm675_vm0, %v2898_v15 }
 0x174   : > { %998 = vmatprep.mubr.f32.mxu0 %v2548_v49  ;;  %1286 = vmatprep.mubr.f32.mxu1 %v2548_v49 }
 0x176   : > { %v554_v47 = vpop.trf.xlu0 }
 0x177   : > { %2203 = vmatmul.mubr.msk.f32.gmra.mrb[22].mxu0 %vm675_vm0, %v554_v47  ;;  %2251 = vmatmul.mubr.msk.f32.gmra.mrb[42].mxu1 %vm675_vm0, %v2906_v23 }
 0x178   : > { %1004 = vmatprep.mubr.f32.mxu0 %v2548_v49  ;;  %1292 = vmatprep.mubr.f32.mxu1 %v2548_v49 }
 0x17a   : > { %v555_v50 = vpop.trf.xlu0 }
 0x17b   : > { %2204 = vmatmul.mubr.msk.f32.gmra.mrb[24].mxu0 %vm675_vm0, %v555_v50  ;;  %2252 = vmatmul.mubr.msk.f32.gmra.mrb[44].mxu1 %vm675_vm0, %v2912_v26 }
 0x17c   : > { %1010 = vmatprep.mubr.f32.mxu0 %v2548_v49  ;;  %1298 = vmatprep.mubr.f32.mxu1 %v2548_v49 }
 0x17e   : > { %v556_v53 = vpop.trf.xlu0 }
 0x17f   : > { %2205 = vmatmul.mubr.msk.f32.gmra.mrb[26].mxu0 %vm675_vm0, %v556_v53  ;;  %2253 = vmatmul.mubr.msk.f32.gmra.mrb[46].mxu1 %vm675_vm0, %v2923_v31 }
 0x180   : > { %1016 = vmatprep.mubr.f32.mxu0 %v2548_v49  ;;  %1304 = vmatprep.mubr.f32.mxu1 %v2548_v49 }
 0x182   : > { %v557_v55 = vpop.trf.xlu0 }
 0x183   : > { %2206 = vmatmul.mubr.msk.f32.gmra.mrb[28].mxu0 %vm675_vm0, %v557_v55  ;;  %2254 = vmatmul.mubr.msk.f32.gmra.mrb[48].mxu1 %vm675_vm0, %v653_v36 }
 0x184   : > { %1022 = vmatprep.mubr.f32.mxu0 %v2548_v49  ;;  %1310 = vmatprep.mubr.f32.mxu1 %v2548_v49 }
 0x186   : > { %v558_v60 = vpop.trf.xlu0 }
 0x187   : > { %2207 = vmatmul.mubr.msk.f32.gmra.mrb[30].mxu0 %vm675_vm0, %v558_v60  ;;  %2255 = vmatmul.mubr.msk.f32.gmra.mrb[50].mxu1 %vm675_vm0, %v654_v40 }
 0x188   : > { %1519 = vmatprep.mubr.f32.mxu1 %v2548_v49  ;;  %1028 = vmatprep.mubr.f32.mxu0 %v2548_v49 }
 0x18b   : > { %2208 = vmatmul.mubr.msk.f32.gmra.mrb[32].mxu0 %vm675_vm0, %v575_v43  ;;  %2256 = vmatmul.mubr.msk.f32.vlgmr.msra.gmra.mrb[52].mxu1 %vm675_vm0, %v1445_v62 }
 0x18c   : > { %2291 = vmatpush1.bf16.msra.mxu1 %v2290_v18  ;;  %1034 = vmatprep.mubr.f32.mxu0 %v2548_v49  ;;  %v584_v18 = vpop.trf.xlu1 }
 0x18d   : > { %2293 = vmatprep.subr.bf16.mxu1 %v2292_v30  ;;  %1590 = vmatprep.mubr.f32.mxu1 %v2548_v49 }
 0x18f   : > { %2209 = vmatmul.mubr.msk.f32.gmra.mrb[34].mxu0 %vm675_vm0, %v576_v45 }
 0x190   : > { %2295 = vmatpush1.bf16.msra.mxu1 %v2294_v22  ;;  %1040 = vmatprep.mubr.f32.mxu0 %v2548_v49  ;;  %v585_v19 = vpop.trf.xlu1 }
 0x193   : > { %2257 = vmatmul.mubr.msk.f32.vlgmr.msra.gmra.mrb[54].mxu1 %vm675_vm0, %v1445_v62  ;;  %2210 = vmatmul.mubr.msk.f32.gmra.mrb[36].mxu0 %vm675_vm0, %v577_v48 }
 0x194   : > { %1046 = vmatprep.mubr.f32.mxu0 %v2548_v49  ;;  %1775 = vmatprep.mubr.f32.mxu1 %v2548_v49  ;;  %v586_v20 = vpop.trf.xlu1 }
 0x197   : > { %2211 = vmatmul.mubr.msk.f32.gmra.mrb[38].mxu0 %vm675_vm0, %v578_v51 }
 0x198   : > { %1052 = vmatprep.mubr.f32.mxu0 %v2548_v49  ;;  %v587_v22 = vpop.trf.xlu1 }
 0x19b   : > { %2212 = vmatmul.mubr.msk.f32.gmra.mrb[40].mxu0 %vm675_vm0, %v579_v58 }
 0x19c   : > { %1058 = vmatprep.mubr.f32.mxu0 %v2548_v49  ;;  %v588_v28 = vpop.trf.xlu1 }
 0x19f   : > { %2213 = vmatmul.mubr.msk.f32.gmra.mrb[42].mxu0 %vm675_vm0, %v580_v63 }
 0x1a0   : > { %1064 = vmatprep.mubr.f32.mxu0 %v2548_v49  ;;  %v589_v29 = vpop.trf.xlu1 }
 0x1a3   : > { %2214 = vmatmul.mubr.msk.f32.gmra.mrb[44].mxu0 %vm675_vm0, %v581_v0 }
 0x1a4   : > { %1070 = vmatprep.mubr.f32.mxu0 %v2548_v49  ;;  %v590_v30 = vpop.trf.xlu1 }
 0x1a7   : > { %2215 = vmatmul.mubr.msk.f32.gmra.mrb[46].mxu0 %vm675_vm0, %v582_v16 }
 0x1a8   : > { %1076 = vmatprep.mubr.f32.mxu0 %v2548_v49 }
 0x1ab   : > { %2216 = vmatmul.mubr.msk.f32.gmra.mrb[48].mxu0 %vm675_vm0, %v583_v17 }
 0x1ac   : > { %1082 = vmatprep.mubr.f32.mxu0 %v2548_v49 }
 0x1af   : > { %2217 = vmatmul.mubr.msk.f32.gmra.mrb[50].mxu0 %vm675_vm0, %v584_v18 }
 0x1b0   : > { %1088 = vmatprep.mubr.f32.mxu0 %v2548_v49 }
 0x1b3   : > { %2218 = vmatmul.mubr.msk.f32.gmra.mrb[52].mxu0 %vm675_vm0, %v585_v19 }
 0x1b4   : > { %1094 = vmatprep.mubr.f32.mxu0 %v2548_v49 }
 0x1b7   : > { %2219 = vmatmul.mubr.msk.f32.gmra.mrb[54].mxu0 %vm675_vm0, %v586_v20 }
 0x1b8   : > { %1100 = vmatprep.mubr.f32.mxu0 %v2548_v49 }
 0x1bb   : > { %2220 = vmatmul.mubr.msk.f32.gmra.mrb[56].mxu0 %vm675_vm0, %v587_v22 }
 0x1bc   : > { %1106 = vmatprep.mubr.f32.mxu0 %v2548_v49 }
 0x1bf   : > { %2221 = vmatmul.mubr.msk.f32.gmra.mrb[58].mxu0 %vm675_vm0, %v588_v28 }
 0x1c0   : > { %1112 = vmatprep.mubr.f32.mxu0 %v2548_v49 }
 0x1c3   : > { %2222 = vmatmul.mubr.msk.f32.gmra.mrb[60].mxu0 %vm675_vm0, %v589_v29 }
 0x1c4   : > { %1118 = vmatprep.mubr.f32.mxu0 %v2548_v49 }
 0x1c7   : > { %2223 = vmatmul.mubr.msk.f32.gmra.mrb[62].mxu0 %vm675_vm0, %v590_v30 }
 0x1c8   : > { %1124 = vmatprep.mubr.f32.mxu0 %v2548_v49 }
 0x1cb   : > { %2224 = vmatmul.mubr.msk.f32.gmra.mrb[64].mxu0 %vm675_vm0, %v2848_v52  ;;  %v665_v52 = vlaneseq }
 0x1cc   : > { %1130 = vmatprep.mubr.f32.mxu0 %v2548_v49 }
 0x1cd   : > { %vm1667_vm6 = vcmp.lt.s32.totalorder %v665_v52, 512 }
 0x1cf   : > { %2225 = vmatmul.mubr.msk.f32.gmra.mrb[66].mxu0 %vm675_vm0, %v2850_v54  ;;  %v3062_v54 = vshrl.u32 %v665_v52, 7 }
 0x1d0   : > { %1136 = vmatprep.mubr.f32.mxu0 %v2548_v49 }
 0x1d3   : > { %2226 = vmatmul.mubr.msk.f32.gmra.mrb[68].mxu0 %vm675_vm0, %v2852_v56  ;;  %v667_v56 = vsub.s32 0, %v3062_v54 }
 0x1d4   : > { %1142 = vmatprep.mubr.f32.mxu0 %v2548_v49 }
 0x1d7   : > { %2227 = vmatmul.mubr.msk.f32.gmra.mrb[70].mxu0 %vm675_vm0, %v2854_v57  ;;  %v663_v57 = vld [vmem:[#allocation5] sm:$0x3] }
 0x1d8   : > { %1148 = vmatprep.mubr.f32.mxu0 %v2548_v49 }
 0x1db   : > { %2228 = vmatmul.mubr.msk.f32.gmra.mrb[72].mxu0 %vm675_vm0, %v2856_v59  ;;  %v671_v59 = vsub.s32 1, %v3062_v54 }
 0x1dc   : > { %1154 = vmatprep.mubr.f32.mxu0 %v2548_v49 }
 0x1dd   : > { %v3069_v1 = vrot.slane %v663_v57, %v671_v59 }
 0x1df   : > { %2229 = vmatmul.mubr.msk.f32.gmra.mrb[74].mxu0 %vm675_vm0, %v2860_v61  ;;  %v3067_v61 = vrot.slane %v663_v57, %v667_v56 }
 0x1f6   : > { %v1162_v2 = vpop.f32.mrb[0].mxu1 }
 0x1f7   : > { %v1163_v3 = vadd.f32 %v1162_v2, %v3067_v61  ;;  %v1164_v4 = vpop.f32.mrb[1].mxu1 }
 0x1f8   : > { %v1165_v5 = vadd.f32 %v1164_v4, %v3069_v1 }
 0x1f9   : > { %1393 = vst [vmem:[%s3074_s20 + $0x260] sm:$0xff] %v1163_v3 }
 0x1fa   : > { %1394 = vst [vmem:[%s3074_s20 + $0x268] sm:$0xff] %v1165_v5  ;;  %v1168_v6 = vpop.f32.mrb[2].mxu1 }
 0x1fb   : > { %v1169_v7 = vadd.f32 %v1168_v6, %v3067_v61  ;;  %v1170_v8 = vpop.f32.mrb[3].mxu1 }
 0x1fc   : > { %v1171_v9 = vadd.f32 %v1170_v8, %v3069_v1 }
 0x1fd   : > { %1395 = vst [vmem:[%s3074_s20 + $0x270] sm:$0xff] %v1169_v7 }
 0x1fe   : > { %1396 = vst [vmem:[%s3074_s20 + $0x278] sm:$0xff] %v1171_v9  ;;  %v1174_v10 = vpop.f32.mrb[4].mxu1 }
 0x1ff   : > { %v1175_v11 = vadd.f32 %v1174_v10, %v3067_v61  ;;  %v1176_v12 = vpop.f32.mrb[5].mxu1 }
 0x200   : > { %v1177_v13 = vadd.f32 %v1176_v12, %v3069_v1 }
 0x201   : > { %1397 = vst [vmem:[%s3074_s20 + $0x280] sm:$0xff] %v1175_v11 }
 0x202   : > { %1398 = vst [vmem:[%s3074_s20 + $0x288] sm:$0xff] %v1177_v13  ;;  %v1180_v14 = vpop.f32.mrb[6].mxu1 }
 0x203   : > { %v1181_v15 = vadd.f32 %v1180_v14, %v3067_v61  ;;  %v1182_v21 = vpop.f32.mrb[7].mxu1 }
 0x204   : > { %v1183_v23 = vadd.f32 %v1182_v21, %v3069_v1 }
 0x205   : > { %1399 = vst [vmem:[%s3074_s20 + $0x290] sm:$0xff] %v1181_v15 }
 0x206   : > { %1400 = vst [vmem:[%s3074_s20 + $0x298] sm:$0xff] %v1183_v23  ;;  %v1186_v24 = vpop.f32.mrb[8].mxu1 }
 0x207   : > { %v1187_v25 = vadd.f32 %v1186_v24, %v3067_v61  ;;  %v1188_v26 = vpop.f32.mrb[9].mxu1 }
 0x208   : > { %v1189_v27 = vadd.f32 %v1188_v26, %v3069_v1 }
 0x209   : > { %1401 = vst [vmem:[%s3074_s20 + $0x2a0] sm:$0xff] %v1187_v25 }
 0x20a   : > { %1402 = vst [vmem:[%s3074_s20 + $0x2a8] sm:$0xff] %v1189_v27  ;;  %v1192_v31 = vpop.f32.mrb[10].mxu1 }
 0x20b   : > { %v1193_v32 = vadd.f32 %v1192_v31, %v3067_v61  ;;  %v1194_v33 = vpop.f32.mrb[11].mxu1 }
 0x20c   : > { %v1195_v35 = vadd.f32 %v1194_v33, %v3069_v1 }
 0x20d   : > { %1403 = vst [vmem:[%s3074_s20 + $0x2b0] sm:$0xff] %v1193_v32 }
 0x20e   : > { %1404 = vst [vmem:[%s3074_s20 + $0x2b8] sm:$0xff] %v1195_v35  ;;  %v1198_v36 = vpop.f32.mrb[12].mxu1 }
 0x20f   : > { %v1199_v37 = vadd.f32 %v1198_v36, %v3067_v61  ;;  %v1200_v38 = vpop.f32.mrb[13].mxu1 }
 0x210   : > { %v1201_v39 = vadd.f32 %v1200_v38, %v3069_v1 }
 0x211   : > { %1405 = vst [vmem:[%s3074_s20 + $0x2c0] sm:$0xff] %v1199_v37 }
 0x212   : > { %1406 = vst [vmem:[%s3074_s20 + $0x2c8] sm:$0xff] %v1201_v39  ;;  %v1204_v40 = vpop.f32.mrb[14].mxu1 }
 0x213   : > { %v1205_v41 = vadd.f32 %v1204_v40, %v3067_v61  ;;  %v1206_v42 = vpop.f32.mrb[15].mxu1 }
 0x214   : > { %v1207_v43 = vadd.f32 %v1206_v42, %v3069_v1 }
 0x215   : > { %1407 = vst [vmem:[%s3074_s20 + $0x2d0] sm:$0xff] %v1205_v41 }
 0x216   : > { %1408 = vst [vmem:[%s3074_s20 + $0x2d8] sm:$0xff] %v1207_v43  ;;  %v1210_v44 = vpop.f32.mrb[16].mxu1 }
 0x217   : > { %v1211_v45 = vadd.f32 %v1210_v44, %v3067_v61  ;;  %v1212_v46 = vpop.f32.mrb[17].mxu1  ;;  %v1674_v44 = vld [vmem:[%s3470_s6] sm:$0xff] }
 0x218   : > { %v1213_v47 = vadd.f32 %v1212_v46, %v3069_v1  ;;  %1680 = vperm.xlu1 %2394, %v1674_v44  }
 0x219   : > { %1409 = vst [vmem:[%s3074_s20 + $0x2e0] sm:$0xff] %v1211_v45 }
 0x21a   : > { %1410 = vst [vmem:[%s3074_s20 + $0x2e8] sm:$0xff] %v1213_v47  ;;  %v1216_v48 = vpop.f32.mrb[18].mxu1 }
 0x21b   : > { %v1217_v50 = vadd.f32 %v1216_v48, %v3067_v61  ;;  %v1218_v51 = vpop.f32.mrb[19].mxu1 }
 0x21c   : > { %v1219_v53 = vadd.f32 %v1218_v51, %v3069_v1 }
 0x21d   : > { %1411 = vst [vmem:[%s3074_s20 + $0x2f0] sm:$0xff] %v1217_v50 }
 0x21e   : > { %1412 = vst [vmem:[%s3074_s20 + $0x2f8] sm:$0xff] %v1219_v53  ;;  %v1222_v55 = vpop.f32.mrb[20].mxu1  ;;  %v934_v58 = vpop.f32.mrb[0].mxu0  ;;  %v1675_v53 = vld [vmem:[%s3470_s6 + $0x8] sm:$0xff] }
 0x21f   : > { %v1223_v60 = vadd.f32 %v1222_v55, %v3067_v61  ;;  %v1224_v62 = vpop.f32.mrb[21].mxu1  ;;  %v935_v63 = vadd.f32 %v934_v58, %v3067_v61  ;;  %v936_v0 = vpop.f32.mrb[1].mxu0  ;;  %1685 = vperm.xlu1 %2394, %v1675_v53  }
 0x220   : > { %v1225_v16 = vadd.f32 %v1224_v62, %v3069_v1  ;;  %v937_v17 = vadd.f32 %v936_v0, %v3069_v1 }
 0x221   : > { %1413 = vst [vmem:[%s3074_s20 + $0x300] sm:$0xff] %v1223_v60  ;;  %1317 = vst [vmem:[%s3074_s20] sm:$0xff] %v935_v63 }
 0x222   : > { %1414 = vst [vmem:[%s3074_s20 + $0x308] sm:$0xff] %v1225_v16  ;;  %v1228_v18 = vpop.f32.mrb[22].mxu1  ;;  %1318 = vst [vmem:[%s3074_s20 + $0x8] sm:$0xff] %v937_v17  ;;  %v940_v19 = vpop.f32.mrb[2].mxu0 }
 0x223   : > { %v1229_v20 = vadd.f32 %v1228_v18, %v3067_v61  ;;  %v1230_v22 = vpop.f32.mrb[23].mxu1  ;;  %v941_v28 = vadd.f32 %v940_v19, %v3067_v61  ;;  %v942_v29 = vpop.f32.mrb[3].mxu0  ;;  %v1676_v18 = vld [vmem:[%s3470_s6 + $0x10] sm:$0xff] }
 0x224   : > { %v1231_v30 = vadd.f32 %v1230_v22, %v3069_v1  ;;  %v943_v56 = vadd.f32 %v942_v29, %v3069_v1  ;;  %1690 = vperm.xlu1 %2394, %v1676_v18  }
 0x225   : > { %1415 = vst [vmem:[%s3074_s20 + $0x310] sm:$0xff] %v1229_v20  ;;  %1319 = vst [vmem:[%s3074_s20 + $0x10] sm:$0xff] %v941_v28 }
 0x226   : > { %1416 = vst [vmem:[%s3074_s20 + $0x318] sm:$0xff] %v1231_v30  ;;  %v1234_v57 = vpop.f32.mrb[24].mxu1  ;;  %1320 = vst [vmem:[%s3074_s20 + $0x18] sm:$0xff] %v943_v56  ;;  %v946_v59 = vpop.f32.mrb[4].mxu0 }
 0x227   : > { %v1235_v2 = vadd.f32 %v1234_v57, %v3067_v61  ;;  %v1236_v3 = vpop.f32.mrb[25].mxu1  ;;  %v947_v4 = vadd.f32 %v946_v59, %v3067_v61  ;;  %v948_v5 = vpop.f32.mrb[5].mxu0 }
 0x228   : > { %v1237_v6 = vadd.f32 %v1236_v3, %v3069_v1  ;;  %v949_v7 = vadd.f32 %v948_v5, %v3069_v1 }
 0x229   : > { %1417 = vst [vmem:[%s3074_s20 + $0x320] sm:$0xff] %v1235_v2  ;;  %1321 = vst [vmem:[%s3074_s20 + $0x20] sm:$0xff] %v947_v4 }
 0x22a   : > { %1418 = vst [vmem:[%s3074_s20 + $0x328] sm:$0xff] %v1237_v6  ;;  %v1240_v8 = vpop.f32.mrb[26].mxu1  ;;  %1322 = vst [vmem:[%s3074_s20 + $0x28] sm:$0xff] %v949_v7  ;;  %v952_v9 = vpop.f32.mrb[6].mxu0 }
 0x22b   : > { %v1241_v10 = vadd.f32 %v1240_v8, %v3067_v61  ;;  %v1242_v11 = vpop.f32.mrb[27].mxu1  ;;  %v953_v12 = vadd.f32 %v952_v9, %v3067_v61  ;;  %v954_v13 = vpop.f32.mrb[7].mxu0 }
 0x22c   : > { %v1243_v14 = vadd.f32 %v1242_v11, %v3069_v1  ;;  %v955_v15 = vadd.f32 %v954_v13, %v3069_v1 }
 0x22d   : > { %1419 = vst [vmem:[%s3074_s20 + $0x330] sm:$0xff] %v1241_v10  ;;  %1323 = vst [vmem:[%s3074_s20 + $0x30] sm:$0xff] %v953_v12 }
 0x22e   : > { %1420 = vst [vmem:[%s3074_s20 + $0x338] sm:$0xff] %v1243_v14  ;;  %v1246_v21 = vpop.f32.mrb[28].mxu1  ;;  %1324 = vst [vmem:[%s3074_s20 + $0x38] sm:$0xff] %v955_v15  ;;  %v958_v23 = vpop.f32.mrb[8].mxu0 }
 0x22f   : > { %v1247_v24 = vadd.f32 %v1246_v21, %v3067_v61  ;;  %v1248_v25 = vpop.f32.mrb[29].mxu1  ;;  %v959_v26 = vadd.f32 %v958_v23, %v3067_v61  ;;  %v960_v27 = vpop.f32.mrb[9].mxu0 }
 0x230   : > { %v1249_v31 = vadd.f32 %v1248_v25, %v3069_v1  ;;  %v961_v32 = vadd.f32 %v960_v27, %v3069_v1 }
 0x231   : > { %1421 = vst [vmem:[%s3074_s20 + $0x340] sm:$0xff] %v1247_v24  ;;  %1325 = vst [vmem:[%s3074_s20 + $0x40] sm:$0xff] %v959_v26 }
 0x232   : > { %1422 = vst [vmem:[%s3074_s20 + $0x348] sm:$0xff] %v1249_v31  ;;  %v1252_v33 = vpop.f32.mrb[30].mxu1  ;;  %1326 = vst [vmem:[%s3074_s20 + $0x48] sm:$0xff] %v961_v32  ;;  %v964_v35 = vpop.f32.mrb[10].mxu0 }
 0x233   : > { %v1253_v36 = vadd.f32 %v1252_v33, %v3067_v61  ;;  %v1254_v37 = vpop.f32.mrb[31].mxu1  ;;  %v965_v38 = vadd.f32 %v964_v35, %v3067_v61  ;;  %v966_v39 = vpop.f32.mrb[11].mxu0 }
 0x234   : > { %v1255_v40 = vadd.f32 %v1254_v37, %v3069_v1  ;;  %v967_v41 = vadd.f32 %v966_v39, %v3069_v1 }
 0x235   : > { %1423 = vst [vmem:[%s3074_s20 + $0x350] sm:$0xff] %v1253_v36  ;;  %1327 = vst [vmem:[%s3074_s20 + $0x50] sm:$0xff] %v965_v38 }
 0x236   : > { %1424 = vst [vmem:[%s3074_s20 + $0x358] sm:$0xff] %v1255_v40  ;;  %v1258_v42 = vpop.f32.mrb[32].mxu1  ;;  %1328 = vst [vmem:[%s3074_s20 + $0x58] sm:$0xff] %v967_v41  ;;  %v970_v43 = vpop.f32.mrb[12].mxu0 }
 0x237   : > { %v1259_v45 = vadd.f32 %v1258_v42, %v3067_v61  ;;  %v1260_v46 = vpop.f32.mrb[33].mxu1  ;;  %v971_v47 = vadd.f32 %v970_v43, %v3067_v61  ;;  %v972_v48 = vpop.f32.mrb[13].mxu0 }
 0x238   : > { %v1261_v50 = vadd.f32 %v1260_v46, %v3069_v1  ;;  %v973_v51 = vadd.f32 %v972_v48, %v3069_v1 }
 0x239   : > { %1425 = vst [vmem:[%s3074_s20 + $0x360] sm:$0xff] %v1259_v45  ;;  %1329 = vst [vmem:[%s3074_s20 + $0x60] sm:$0xff] %v971_v47 }
 0x23a   : > { %1426 = vst [vmem:[%s3074_s20 + $0x368] sm:$0xff] %v1261_v50  ;;  %v1264_v55 = vpop.f32.mrb[34].mxu1  ;;  %1330 = vst [vmem:[%s3074_s20 + $0x68] sm:$0xff] %v973_v51  ;;  %v976_v58 = vpop.f32.mrb[14].mxu0 }
 0x23b   : > { %v1265_v60 = vadd.f32 %v1264_v55, %v3067_v61  ;;  %v1266_v62 = vpop.f32.mrb[35].mxu1  ;;  %v977_v63 = vadd.f32 %v976_v58, %v3067_v61  ;;  %v978_v0 = vpop.f32.mrb[15].mxu0 }
 0x23c   : > { %v1267_v16 = vadd.f32 %v1266_v62, %v3069_v1  ;;  %v979_v17 = vadd.f32 %v978_v0, %v3069_v1 }
 0x23d   : > { %1427 = vst [vmem:[%s3074_s20 + $0x370] sm:$0xff] %v1265_v60  ;;  %1331 = vst [vmem:[%s3074_s20 + $0x70] sm:$0xff] %v977_v63 }
 0x23e   : > { %1428 = vst [vmem:[%s3074_s20 + $0x378] sm:$0xff] %v1267_v16  ;;  %v1270_v19 = vpop.f32.mrb[36].mxu1  ;;  %1332 = vst [vmem:[%s3074_s20 + $0x78] sm:$0xff] %v979_v17  ;;  %v982_v20 = vpop.f32.mrb[16].mxu0 }
 0x23f   : > { %v1271_v22 = vadd.f32 %v1270_v19, %v3067_v61  ;;  %v1272_v28 = vpop.f32.mrb[37].mxu1  ;;  %v983_v29 = vadd.f32 %v982_v20, %v3067_v61  ;;  %v984_v30 = vpop.f32.mrb[17].mxu0 }
 0x240   : > { %v1273_v56 = vadd.f32 %v1272_v28, %v3069_v1  ;;  %v985_v57 = vadd.f32 %v984_v30, %v3069_v1 }
 0x241   : > { %1429 = vst [vmem:[%s3074_s20 + $0x380] sm:$0xff] %v1271_v22  ;;  %1333 = vst [vmem:[%s3074_s20 + $0x80] sm:$0xff] %v983_v29 }
 0x242   : > { %1430 = vst [vmem:[%s3074_s20 + $0x388] sm:$0xff] %v1273_v56  ;;  %v1276_v59 = vpop.f32.mrb[38].mxu1  ;;  %1334 = vst [vmem:[%s3074_s20 + $0x88] sm:$0xff] %v985_v57  ;;  %v988_v2 = vpop.f32.mrb[18].mxu0 }
 0x243   : > { %v1277_v3 = vadd.f32 %v1276_v59, %v3067_v61  ;;  %v1278_v4 = vpop.f32.mrb[39].mxu1  ;;  %v989_v5 = vadd.f32 %v988_v2, %v3067_v61  ;;  %v990_v6 = vpop.f32.mrb[19].mxu0 }
 0x244   : > { %v1279_v7 = vadd.f32 %v1278_v4, %v3069_v1  ;;  %v991_v8 = vadd.f32 %v990_v6, %v3069_v1  ;;  %v1450_v56 = vpop.permute.xlu0 %1449 }
 0x245   : > { %1431 = vst [vmem:[%s3074_s20 + $0x390] sm:$0xff] %v1277_v3  ;;  %1335 = vst [vmem:[%s3074_s20 + $0x90] sm:$0xff] %v989_v5 }
 0x246   : > { %1432 = vst [vmem:[%s3074_s20 + $0x398] sm:$0xff] %v1279_v7  ;;  %v1282_v9 = vpop.f32.mrb[40].mxu1  ;;  %1336 = vst [vmem:[%s3074_s20 + $0x98] sm:$0xff] %v991_v8  ;;  %v994_v10 = vpop.f32.mrb[20].mxu0 }
 0x247   : > { %v1283_v11 = vadd.f32 %v1282_v9, %v3067_v61  ;;  %v1284_v12 = vpop.f32.mrb[41].mxu1  ;;  %v995_v13 = vadd.f32 %v994_v10, %v3067_v61  ;;  %v996_v14 = vpop.f32.mrb[21].mxu0 }
 0x248   : > { %v1285_v15 = vadd.f32 %v1284_v12, %v3069_v1  ;;  %v997_v21 = vadd.f32 %v996_v14, %v3069_v1  ;;  %v1612_v7 = vpop.permute.xlu1 %1611 }
 0x249   : > { %1433 = vst [vmem:[%s3074_s20 + $0x3a0] sm:$0xff] %v1283_v11  ;;  %1337 = vst [vmem:[%s3074_s20 + $0xa0] sm:$0xff] %v995_v13  ;;  %v2550_v13 = vmov -1.0  }
 0x24a   : > { %1434 = vst [vmem:[%s3074_s20 + $0x3a8] sm:$0xff] %v1285_v15  ;;  %v1288_v23 = vpop.f32.mrb[42].mxu1  ;;  %1338 = vst [vmem:[%s3074_s20 + $0xa8] sm:$0xff] %v997_v21  ;;  %v1000_v24 = vpop.f32.mrb[22].mxu0  ;;  %v3262_v15 = vld [vmem:[%s3505_s5] sm:$0xff] }
 0x24b   : > { %v1289_v25 = vadd.f32 %v1288_v23, %v3067_v61  ;;  %v1290_v26 = vpop.f32.mrb[43].mxu1  ;;  %v1001_v27 = vadd.f32 %v1000_v24, %v3067_v61  ;;  %v1002_v31 = vpop.f32.mrb[23].mxu0 }
 0x24c   : > { %v1291_v32 = vadd.f32 %v1290_v26, %v3069_v1  ;;  %v1003_v33 = vadd.f32 %v1002_v31, %v3069_v1 }
 0x24d   : > { %1435 = vst [vmem:[%s3074_s20 + $0x3b0] sm:$0xff] %v1289_v25  ;;  %1339 = vst [vmem:[%s3074_s20 + $0xb0] sm:$0xff] %v1001_v27 }
 0x24e   : > { %1436 = vst [vmem:[%s3074_s20 + $0x3b8] sm:$0xff] %v1291_v32  ;;  %v1294_v35 = vpop.f32.mrb[44].mxu1  ;;  %1340 = vst [vmem:[%s3074_s20 + $0xb8] sm:$0xff] %v1003_v33  ;;  %v1006_v36 = vpop.f32.mrb[24].mxu0 }
 0x24f   : > { %v1295_v37 = vadd.f32 %v1294_v35, %v3067_v61  ;;  %v1296_v38 = vpop.f32.mrb[45].mxu1  ;;  %v1007_v39 = vadd.f32 %v1006_v36, %v3067_v61  ;;  %v1008_v40 = vpop.f32.mrb[25].mxu0 }
 0x250   : > { %v1297_v41 = vadd.f32 %v1296_v38, %v3069_v1  ;;  %v1009_v42 = vadd.f32 %v1008_v40, %v3069_v1  ;;  %v3274_v38 = vld [vmem:[%s3505_s5 + $0x8] sm:$0xff] }
 0x251   : > { %1437 = vst [vmem:[%s3074_s20 + $0x3c0] sm:$0xff] %v1295_v37  ;;  %1341 = vst [vmem:[%s3074_s20 + $0xc0] sm:$0xff] %v1007_v39 }
 0x252   : > { %1438 = vst [vmem:[%s3074_s20 + $0x3c8] sm:$0xff] %v1297_v41  ;;  %v1300_v43 = vpop.f32.mrb[46].mxu1  ;;  %1342 = vst [vmem:[%s3074_s20 + $0xc8] sm:$0xff] %v1009_v42  ;;  %v1012_v44 = vpop.f32.mrb[26].mxu0 }
 0x253   : > { %v1301_v45 = vadd.f32 %v1300_v43, %v3067_v61  ;;  %v1302_v46 = vpop.f32.mrb[47].mxu1  ;;  %v1013_v47 = vadd.f32 %v1012_v44, %v3067_v61  ;;  %v1014_v48 = vpop.f32.mrb[27].mxu0 }
 0x254   : > { %v1303_v50 = vadd.f32 %v1302_v46, %v3069_v1  ;;  %v1015_v51 = vadd.f32 %v1014_v48, %v3069_v1 }
 0x255   : > { %1439 = vst [vmem:[%s3074_s20 + $0x3d0] sm:$0xff] %v1301_v45  ;;  %1343 = vst [vmem:[%s3074_s20 + $0xd0] sm:$0xff] %v1013_v47 }
 0x256   : > { %1440 = vst [vmem:[%s3074_s20 + $0x3d8] sm:$0xff] %v1303_v50  ;;  %v1306_v53 = vpop.f32.mrb[48].mxu1  ;;  %1344 = vst [vmem:[%s3074_s20 + $0xd8] sm:$0xff] %v1015_v51  ;;  %v1018_v55 = vpop.f32.mrb[28].mxu0 }
 0x257   : > { %v1307_v58 = vadd.f32 %v1306_v53, %v3067_v61  ;;  %v1308_v60 = vpop.f32.mrb[49].mxu1  ;;  %v1019_v62 = vadd.f32 %v1018_v55, %v3067_v61  ;;  %v1020_v63 = vpop.f32.mrb[29].mxu0 }
 0x258   : > { %v1309_v0 = vadd.f32 %v1308_v60, %v3069_v1  ;;  %v1021_v16 = vadd.f32 %v1020_v63, %v3069_v1 }
 0x259   : > { %1441 = vst [vmem:[%s3074_s20 + $0x3e0] sm:$0xff] %v1307_v58  ;;  %1345 = vst [vmem:[%s3074_s20 + $0xe0] sm:$0xff] %v1019_v62  ;;  %v3288_v58 = vld [vmem:[%s3505_s5 + $0x10] sm:$0xff] }
 0x25a   : > { %1442 = vst [vmem:[%s3074_s20 + $0x3e8] sm:$0xff] %v1309_v0  ;;  %v1312_v17 = vpop.f32.mrb[50].mxu1  ;;  %1346 = vst [vmem:[%s3074_s20 + $0xe8] sm:$0xff] %v1021_v16  ;;  %v1024_v18 = vpop.f32.mrb[30].mxu0 }
 0x25b   : > { %v1313_v19 = vadd.f32 %v1312_v17, %v3067_v61  ;;  %v1314_v20 = vpop.f32.mrb[51].mxu1  ;;  %v1025_v22 = vadd.f32 %v1024_v18, %v3067_v61  ;;  %v1026_v28 = vpop.f32.mrb[31].mxu0 }
 0x25c   : > { %v1315_v29 = vadd.f32 %v1314_v20, %v3069_v1  ;;  %v1027_v30 = vadd.f32 %v1026_v28, %v3069_v1 }
 0x25d   : > { %1443 = vst [vmem:[%s3074_s20 + $0x3f0] sm:$0xff] %v1313_v19  ;;  %1347 = vst [vmem:[%s3074_s20 + $0xf0] sm:$0xff] %v1025_v22 }
 0x25e   : > { %1444 = vst [vmem:[%s3074_s20 + $0x3f8] sm:$0xff] %v1315_v29  ;;  %v1521_v57 = vpop.f32.mrb[52].mxu1  ;;  %1348 = vst [vmem:[%s3074_s20 + $0xf8] sm:$0xff] %v1027_v30  ;;  %v1030_v59 = vpop.f32.mrb[32].mxu0  ;;  %v3300_v29 = vld [vmem:[%s3505_s5 + $0x18] sm:$0xff] }
 0x25f   : > { %v1522_v2 = vadd.f32 %v1521_v57, %v1450_v56  ;;  %v1523_v3 = vpop.f32.mrb[53].mxu1  ;;  %v1031_v4 = vadd.f32 %v1030_v59, %v3067_v61  ;;  %v1032_v5 = vpop.f32.mrb[33].mxu0  ;;  %v2551_v57 = vmov 1966171168  }
 0x260   : > { %v1524_v6 = vadd.f32 %v1523_v3, %v1450_v56  ;;  %v1033_v8 = vadd.f32 %v1032_v5, %v3069_v1  ;;  %v1644_v59 = vunpack.c.l.s4 %v2551_v57 }
 0x261   : > { %vm1597_vm1 = vcmp.gt.f32.partialorder %v1522_v2, 0.0  ;;  %1349 = vst [vmem:[%s3074_s20 + $0x100] sm:$0xff] %v1031_v4 }
 0x262   : > { %v1605_v9 = vsel %vm1597_vm1, 1, %v2549_v34  ;;  %vm1598_vm2 = vcmp.gt.f32.partialorder %v1524_v6, 0.0  ;;  %1350 = vst [vmem:[%s3074_s20 + $0x108] sm:$0xff] %v1033_v8  ;;  %v1036_v10 = vpop.f32.mrb[34].mxu0  ;;  %v1601_v24 = vsel %vm1597_vm1, 1.0, %v2550_v13 }
 0x263   : > { %v1606_v11 = vsel %vm1598_vm2, 1, %v2549_v34  ;;  %v1613_v12 = vmul.u32 %v1612_v7, %v1605_v9  ;;  %v1602_v14 = vsel %vm1598_vm2, 1.0, %v2550_v13  ;;  %v1037_v21 = vadd.f32 %v1036_v10, %v3067_v61  ;;  %v1038_v23 = vpop.f32.mrb[35].mxu0 }
 0x264   : > { %v1614_v25 = vmul.u32 %v1612_v7, %v1606_v11  ;;  %1711 = vmatprep.subr.mxu1 %v1602_v14  ;;  %v1039_v26 = vadd.f32 %v1038_v23, %v3069_v1 }
 0x265   : > { %v1617_v27 = vrot.slane %v1613_v12, 4  ;;  %1712 = vmatpush1.msra.mxu1 %v1601_v24  ;;  %1351 = vst [vmem:[%s3074_s20 + $0x110] sm:$0xff] %v1037_v21 }
 0x266   : > { %v1623_v31 = vrot.slane %v1614_v25, 4  ;;  %v1592_v32 = vpop.f32.mrb[54].mxu1  ;;  %2258 = vmatmul.mubr.msk.f32.vlgmr.msra.gmra.mrb[56].mxu1 %vm1698_vm3, %v3262_v15  ;;  %1352 = vst [vmem:[%s3074_s20 + $0x118] sm:$0xff] %v1039_v26  ;;  %v1042_v33 = vpop.f32.mrb[36].mxu0 }
 0x267   : > { %v1618_v35 = vadd.s32 %v1617_v27, %v1613_v12  ;;  %v1593_v36 = vadd.f32 %v1592_v32, %v1450_v56  ;;  %v1594_v37 = vpop.f32.mrb[55].mxu1  ;;  %1781 = vmatprep.mubr.f32.mxu1 %v2548_v49  ;;  %v1043_v39 = vadd.f32 %v1042_v33, %v3067_v61  ;;  %v1044_v40 = vpop.f32.mrb[37].mxu0  ;;  %v1645_v12 = vunpack.c.0.s8 %v1644_v59 }
 0x268   : > { %v1624_v41 = vadd.s32 %v1623_v31, %v1614_v25  ;;  %v1595_v42 = vadd.f32 %v1594_v37, %v1450_v56  ;;  %v1045_v43 = vadd.f32 %v1044_v40, %v3069_v1 }
 0x269   : > { %v1619_v44 = vrot.slane %v1618_v35, 2  ;;  %vm1599_vm4 = vcmp.gt.f32.partialorder %v1593_v36, 0.0  ;;  %1353 = vst [vmem:[%s3074_s20 + $0x120] sm:$0xff] %v1043_v39  ;;  %v1648_v31 = vsub.s32 %v1645_v12, %v3062_v54 }
 0x26a   : > { %v1625_v45 = vrot.slane %v1624_v41, 2  ;;  %v1603_v46 = vsel %vm1599_vm4, 1.0, %v2550_v13  ;;  %v1607_v47 = vsel %vm1599_vm4, 1, %v2549_v34  ;;  %vm1600_vm5 = vcmp.gt.f32.partialorder %v1595_v42, 0.0  ;;  %2259 = vmatmul.mubr.msk.f32.gmra.mrb[58].mxu1 %vm1698_vm3, %v3274_v38  ;;  %1354 = vst [vmem:[%s3074_s20 + $0x128] sm:$0xff] %v1045_v43  ;;  %v1048_v48 = vpop.f32.mrb[38].mxu0 }
 0x26b   : > { %v1620_v50 = vadd.s32 %v1619_v44, %v1618_v35  ;;  %v1615_v51 = vmul.u32 %v1612_v7, %v1607_v47  ;;  %v1608_v53 = vsel %vm1600_vm5, 1, %v2549_v34  ;;  %v1604_v55 = vsel %vm1600_vm5, 1.0, %v2550_v13  ;;  %1787 = vmatprep.mubr.f32.mxu1 %v2548_v49  ;;  %v1050_v60 = vpop.f32.mrb[39].mxu0 }
 0x26c   : > { %v1626_v62 = vadd.s32 %v1625_v45, %v1624_v41  ;;  %v1616_v63 = vmul.u32 %v1612_v7, %v1608_v53  ;;  %1800 = vmatprep.subr.mxu1 %v1604_v55  ;;  %v1049_v0 = vadd.f32 %v1048_v48, %v3067_v61  ;;  %v1051_v16 = vadd.f32 %v1050_v60, %v3069_v1 }
 0x26d   : > { %v1621_v17 = vrot.slane %v1620_v50, 1  ;;  %v1629_v34 = vrot.slane %v1615_v51, 4  ;;  %1801 = vmatpush1.msra.mxu1 %v1603_v46 }
 0x26e   : > { %v1627_v18 = vrot.slane %v1626_v62, 1  ;;  %v1635_v19 = vrot.slane %v1616_v63, 4  ;;  %2260 = vmatmul.mubr.msk.f32.gmra.mrb[60].mxu1 %vm1698_vm3, %v3288_v58  ;;  %1355 = vst [vmem:[%s3074_s20 + $0x130] sm:$0xff] %v1049_v0  ;;  %1356 = vst [vmem:[%s3074_s20 + $0x138] sm:$0xff] %v1051_v16  ;;  %v1054_v20 = vpop.f32.mrb[40].mxu0 }
 0x26f   : > { %v1622_v22 = vadd.s32 %v1621_v17, %v1620_v50  ;;  %v1630_v28 = vadd.s32 %v1629_v34, %v1615_v51  ;;  %1793 = vmatprep.mubr.f32.mxu1 %v2548_v49  ;;  %v1055_v30 = vadd.f32 %v1054_v20, %v3067_v61  ;;  %v1056_v56 = vpop.f32.mrb[41].mxu0 }
 0x270   : > { %v1628_v2 = vadd.s32 %v1627_v18, %v1626_v62  ;;  %v1636_v3 = vadd.s32 %v1635_v19, %v1616_v63  ;;  %v1057_v4 = vadd.f32 %v1056_v56, %v3069_v1 }
 0x271   : > { %v1631_v5 = vrot.slane %v1630_v28, 2  ;;  %1357 = vst [vmem:[%s3074_s20 + $0x140] sm:$0xff] %v1055_v30 }
 0x272   : > { %v1641_v6 = vcombine.low %v1622_v22, %v1628_v2  ;;  %v1637_v7 = vrot.slane %v1636_v3, 2  ;;  %2261 = vmatmul.mubr.msk.f32.gmra.mrb[62].mxu1 %vm1698_vm3, %v3300_v29  ;;  %1358 = vst [vmem:[%s3074_s20 + $0x148] sm:$0xff] %v1057_v4  ;;  %v1060_v8 = vpop.f32.mrb[42].mxu0 }
 0x273   : > { %v1632_v9 = vadd.s32 %v1631_v5, %v1630_v28  ;;  %1864 = vmatprep.mubr.f32.mxu1 %v2548_v49  ;;  %v1061_v10 = vadd.f32 %v1060_v8, %v3067_v61  ;;  %v1062_v11 = vpop.f32.mrb[43].mxu0 }
 0x274   : > { %v1638_v13 = vadd.s32 %v1637_v7, %v1636_v3  ;;  %v1063_v14 = vadd.f32 %v1062_v11, %v3069_v1  ;;  %v1649_v37 = vrot.slane %v1641_v6, %v1648_v31 }
 0x275   : > { %v1633_v21 = vrot.slane %v1632_v9, 1  ;;  %1359 = vst [vmem:[%s3074_s20 + $0x150] sm:$0xff] %v1061_v10 }
 0x276   : > { %v1639_v23 = vrot.slane %v1638_v13, 1  ;;  %2262 = vmatmul.mubr.msk.f32.vlgmr.msra.gmra.mrb[64].mxu1 %vm1698_vm3, %v3262_v15  ;;  %1360 = vst [vmem:[%s3074_s20 + $0x158] sm:$0xff] %v1063_v14  ;;  %v1066_v24 = vpop.f32.mrb[44].mxu0 }
 0x277   : > { %v1634_v25 = vadd.s32 %v1633_v21, %v1632_v9  ;;  %1870 = vmatprep.mubr.f32.mxu1 %v2548_v49  ;;  %v1067_v26 = vadd.f32 %v1066_v24, %v3067_v61  ;;  %v1068_v27 = vpop.f32.mrb[45].mxu0 }
 0x278   : > { %v1640_v32 = vadd.s32 %v1639_v23, %v1638_v13  ;;  %v1069_v33 = vadd.f32 %v1068_v27, %v3069_v1 }
 0x279   : > { %1361 = vst [vmem:[%s3074_s20 + $0x160] sm:$0xff] %v1067_v26 }
 0x27a   : > { %v1642_v15 = vcombine.low %v1634_v25, %v1640_v32  ;;  %2263 = vmatmul.mubr.msk.f32.gmra.mrb[66].mxu1 %vm1698_vm3, %v3274_v38  ;;  %1362 = vst [vmem:[%s3074_s20 + $0x168] sm:$0xff] %v1069_v33  ;;  %v1072_v35 = vpop.f32.mrb[46].mxu0 }
 0x27b   : > { %1876 = vmatprep.mubr.f32.mxu1 %v2548_v49  ;;  %v1073_v36 = vadd.f32 %v1072_v35, %v3067_v61  ;;  %v1074_v54 = vpop.f32.mrb[47].mxu0 }
 0x27c   : > { %v1656_v39 = vrot.slane %v1642_v15, %v1648_v31  ;;  %v1075_v40 = vadd.f32 %v1074_v54, %v3069_v1 }
 0x27d   : > { %1363 = vst [vmem:[%s3074_s20 + $0x170] sm:$0xff] %v1073_v36 }
 0x27e   : > { %v1657_v41 = vcombine.low %v1649_v37, %v1656_v39  ;;  %2264 = vmatmul.mubr.msk.f32.gmra.mrb[68].mxu1 %vm1698_vm3, %v3288_v58  ;;  %1364 = vst [vmem:[%s3074_s20 + $0x178] sm:$0xff] %v1075_v40  ;;  %v1078_v38 = vpop.f32.mrb[48].mxu0 }
 0x27f   : > { %1882 = vmatprep.mubr.f32.mxu1 %v2548_v49  ;;  %v1079_v42 = vadd.f32 %v1078_v38, %v3067_v61  ;;  %v1080_v43 = vpop.f32.mrb[49].mxu0 }
 0x280   : > { %v1664_v44 = vrot.slane %v1657_v41, %v1648_v31  ;;  %v1081_v45 = vadd.f32 %v1080_v43, %v3069_v1 }
 0x281   : > { %1365 = vst [vmem:[%s3074_s20 + $0x180] sm:$0xff] %v1079_v42 }
 0x282   : > { %1669 = vst.msk [vmem:[%s498_s13] sm:$0xf] %vm1667_vm6, %v1664_v44  ;;  %2265 = vmatmul.mubr.msk.f32.gmra.mrb[70].mxu1 %vm1698_vm3, %v3300_v29  ;;  %1366 = vst [vmem:[%s3074_s20 + $0x188] sm:$0xff] %v1081_v45  ;;  %v1084_v46 = vpop.f32.mrb[50].mxu0 }
 0x283   : > { %v1085_v52 = vadd.f32 %v1084_v46, %v3067_v61  ;;  %v1086_v49 = vpop.f32.mrb[51].mxu0 }
 0x284   : > { %v1087_v47 = vadd.f32 %v1086_v49, %v3069_v1 }
 0x285   : > { %1367 = vst [vmem:[%s3074_s20 + $0x190] sm:$0xff] %v1085_v52 }
 0x286   : > { %1368 = vst [vmem:[%s3074_s20 + $0x198] sm:$0xff] %v1087_v47  ;;  %v1090_v48 = vpop.f32.mrb[52].mxu0  ;;  %v1696_v47 = vpop.permute.xlu0 %1695 }
 0x287   : > { %v1091_v50 = vadd.f32 %v1090_v48, %v3067_v61  ;;  %v1092_v51 = vpop.f32.mrb[53].mxu0 }
 0x288   : > { %v1093_v53 = vadd.f32 %v1092_v51, %v3069_v1 }
 0x289   : > { %1369 = vst [vmem:[%s3074_s20 + $0x1a0] sm:$0xff] %v1091_v50 }
 0x28a   : > { %1370 = vst [vmem:[%s3074_s20 + $0x1a8] sm:$0xff] %v1093_v53  ;;  %v1096_v55 = vpop.f32.mrb[54].mxu0 }
 0x28b   : > { %v1097_v58 = vadd.f32 %v1096_v55, %v3067_v61  ;;  %v1098_v60 = vpop.f32.mrb[55].mxu0 }
 0x28c   : > { %v1099_v62 = vadd.f32 %v1098_v60, %v3069_v1 }
 0x28d   : > { %1371 = vst [vmem:[%s3074_s20 + $0x1b0] sm:$0xff] %v1097_v58 }
 0x28e   : > { %1372 = vst [vmem:[%s3074_s20 + $0x1b8] sm:$0xff] %v1099_v62  ;;  %v1102_v63 = vpop.f32.mrb[56].mxu0 }
 0x28f   : > { %v1103_v0 = vadd.f32 %v1102_v63, %v3067_v61  ;;  %v1104_v16 = vpop.f32.mrb[57].mxu0 }
 0x290   : > { %v1105_v17 = vadd.f32 %v1104_v16, %v3069_v1 }
 0x291   : > { %1373 = vst [vmem:[%s3074_s20 + $0x1c0] sm:$0xff] %v1103_v0 }
 0x292   : > { %1374 = vst [vmem:[%s3074_s20 + $0x1c8] sm:$0xff] %v1105_v17  ;;  %v1108_v34 = vpop.f32.mrb[58].mxu0 }
 0x293   : > { %v1109_v18 = vadd.f32 %v1108_v34, %v3067_v61  ;;  %v1110_v19 = vpop.f32.mrb[59].mxu0 }
 0x294   : > { %v1111_v20 = vadd.f32 %v1110_v19, %v3069_v1 }
 0x295   : > { %1375 = vst [vmem:[%s3074_s20 + $0x1d0] sm:$0xff] %v1109_v18 }
 0x296   : > { %1376 = vst [vmem:[%s3074_s20 + $0x1d8] sm:$0xff] %v1111_v20  ;;  %v1114_v22 = vpop.f32.mrb[60].mxu0 }
 0x297   : > { %v1115_v28 = vadd.f32 %v1114_v22, %v3067_v61  ;;  %v1116_v29 = vpop.f32.mrb[61].mxu0  ;;  %v1681_v54 = vpop.permute.xlu1 %1680 }
 0x298   : > { %v1117_v30 = vadd.f32 %v1116_v29, %v3069_v1 }
 0x299   : > { %1377 = vst [vmem:[%s3074_s20 + $0x1e0] sm:$0xff] %v1115_v28 }
 0x29a   : > { %1378 = vst [vmem:[%s3074_s20 + $0x1e8] sm:$0xff] %v1117_v30  ;;  %v1120_v56 = vpop.f32.mrb[62].mxu0 }
 0x29b   : > { %v1121_v57 = vadd.f32 %v1120_v56, %v3067_v61  ;;  %v1122_v59 = vpop.f32.mrb[63].mxu0 }
 0x29c   : > { %v1123_v2 = vadd.f32 %v1122_v59, %v3069_v1 }
 0x29d   : > { %1379 = vst [vmem:[%s3074_s20 + $0x1f0] sm:$0xff] %v1121_v57 }
 0x29e   : > { %1380 = vst [vmem:[%s3074_s20 + $0x1f8] sm:$0xff] %v1123_v2  ;;  %v1126_v3 = vpop.f32.mrb[64].mxu0  ;;  %v1686_v39 = vpop.permute.xlu1 %1685 }
 0x29f   : > { %v1127_v4 = vadd.f32 %v1126_v3, %v3067_v61  ;;  %v1128_v5 = vpop.f32.mrb[65].mxu0 }
 0x2a0   : > { %v1129_v6 = vadd.f32 %v1128_v5, %v3069_v1 }
 0x2a1   : > { %1381 = vst [vmem:[%s3074_s20 + $0x200] sm:$0xff] %v1127_v4 }
 0x2a2   : > { %1382 = vst [vmem:[%s3074_s20 + $0x208] sm:$0xff] %v1129_v6  ;;  %v1132_v7 = vpop.f32.mrb[66].mxu0 }
 0x2a3   : > { %v1133_v8 = vadd.f32 %v1132_v7, %v3067_v61  ;;  %v1134_v9 = vpop.f32.mrb[67].mxu0  ;;  %v1691_v44 = vpop.permute.xlu1 %1690 }
 0x2a4   : > { %v1135_v10 = vadd.f32 %v1134_v9, %v3069_v1 }
 0x2a5   : > { %1383 = vst [vmem:[%s3074_s20 + $0x210] sm:$0xff] %v1133_v8 }
 0x2a6   : > { %1384 = vst [vmem:[%s3074_s20 + $0x218] sm:$0xff] %v1135_v10  ;;  %v1138_v11 = vpop.f32.mrb[68].mxu0 }
 0x2a7   : > { %v1139_v12 = vadd.f32 %v1138_v11, %v3067_v61  ;;  %v1140_v13 = vpop.f32.mrb[69].mxu0 }
 0x2a8   : > { %v1141_v14 = vadd.f32 %v1140_v13, %v3069_v1 }
 0x2a9   : > { %1385 = vst [vmem:[%s3074_s20 + $0x220] sm:$0xff] %v1139_v12 }
 0x2aa   : > { %1386 = vst [vmem:[%s3074_s20 + $0x228] sm:$0xff] %v1141_v14  ;;  %v1144_v21 = vpop.f32.mrb[70].mxu0 }
 0x2ab   : > { %v1145_v23 = vadd.f32 %v1144_v21, %v3067_v61  ;;  %v1146_v24 = vpop.f32.mrb[71].mxu0 }
 0x2ac   : > { %v1147_v25 = vadd.f32 %v1146_v24, %v3069_v1 }
 0x2ad   : > { %1387 = vst [vmem:[%s3074_s20 + $0x230] sm:$0xff] %v1145_v23 }
 0x2ae   : > { %1388 = vst [vmem:[%s3074_s20 + $0x238] sm:$0xff] %v1147_v25  ;;  %v1150_v26 = vpop.f32.mrb[72].mxu0 }
 0x2af   : > { %v1151_v27 = vadd.f32 %v1150_v26, %v3067_v61  ;;  %v1152_v31 = vpop.f32.mrb[73].mxu0 }
 0x2b0   : > { %v1153_v32 = vadd.f32 %v1152_v31, %v3069_v1 }
 0x2b1   : > { %1389 = vst [vmem:[%s3074_s20 + $0x240] sm:$0xff] %v1151_v27 }
 0x2b2   : > { %1390 = vst [vmem:[%s3074_s20 + $0x248] sm:$0xff] %v1153_v32  ;;  %v1156_v33 = vpop.f32.mrb[74].mxu0 }
 0x2b3   : > { %v1157_v15 = vadd.f32 %v1156_v33, %v3067_v61  ;;  %v1158_v35 = vpop.f32.mrb[75].mxu0 }
 0x2b4   : > { %v1159_v36 = vadd.f32 %v1158_v35, %v3069_v1 }
 0x2b5   : > { %1391 = vst [vmem:[%s3074_s20 + $0x250] sm:$0xff] %v1157_v15 }
 0x2b6   : > { %1392 = vst [vmem:[%s3074_s20 + $0x258] sm:$0xff] %v1159_v36  ;;  %s3509_s20 = sld [smem:[#allocation11_spill]] (%p3508_p2) }
 0x2bc   : > { %s2268_s30 = sshll.u32 (%p3508_p2), %s3509_s20, 5 }
 0x2bd   : > { %s1932_s27 = sadd.s32 (%p3508_p2), %s2268_s30, %s3305_s12 }
 0x2be   : > { %s2269_s28 = sshll.u32 (%p3508_p2), %s1932_s27, 3 }
 0x2bf   : > { %s1934_s10 = scalar_lea.vmem (%p3508_p2), %s3510_s23, %s2269_s28 }
 0x339   : > { %v1777_v37 = vpop.f32.mrb[56].mxu1 }
 0x33a   : > { %v1778_v40 = vadd.f32 %v1777_v37, %v1681_v54  ;;  %v1779_v41 = vpop.f32.mrb[57].mxu1 }
 0x33b   : > { %v1780_v38 = vadd.f32 %v1779_v41, %v1681_v54 }
 0x33c   : > { %1889 = vst [vmem:[%s3402_s29] sm:$0xff] %v1778_v40 }
 0x33d   : > { %1890 = vst [vmem:[%s3402_s29 + $0x8] sm:$0xff] %v1780_v38  ;;  %v1783_v61 = vpop.f32.mrb[58].mxu1 }
 0x33e   : > { %v1785_v1 = vpop.f32.mrb[59].mxu1  ;;  %v1784_v42 = vadd.f32 %v1783_v61, %v1686_v39 }
 0x33f   : > { %v1786_v43 = vadd.f32 %v1785_v1, %v1686_v39 }
 0x340   : > { %1893 = vst [vmem:[%s3402_s29 + $0x20] sm:$0xff] %v1784_v42 }
 0x341   : > { %1894 = vst [vmem:[%s3402_s29 + $0x28] sm:$0xff] %v1786_v43  ;;  %v1789_v45 = vpop.f32.mrb[60].mxu1 }
 0x342   : > { %v1791_v46 = vpop.f32.mrb[61].mxu1  ;;  %v1790_v52 = vadd.f32 %v1789_v45, %v1691_v44 }
 0x343   : > { %v1792_v49 = vadd.f32 %v1791_v46, %v1691_v44  ;;  %v1947_v56 = vld [vmem:[%s3402_s29] sm:$0xff] (%p3508_p2) }
 0x344   : > { %1897 = vst [vmem:[%s3402_s29 + $0x40] sm:$0xff] %v1790_v52  ;;  %v1949_v57 = vld [vmem:[%s3402_s29 + $0x8] sm:$0xff] (%p3508_p2)  ;;  %1948 = vst [vmem:[%s1934_s10] sm:$0xff] (%p3508_p2), %v1947_v56 }
 0x345   : > { %v1795_v48 = vpop.f32.mrb[62].mxu1  ;;  %1898 = vst [vmem:[%s3402_s29 + $0x48] sm:$0xff] %v1792_v49  ;;  %1950 = vst [vmem:[%s1934_s10 + $0x8] sm:$0xff] (%p3508_p2), %v1949_v57 }
 0x346   : > { %v1796_v50 = vadd.f32 %v1795_v48, %v1696_v47  ;;  %v1797_v51 = vpop.f32.mrb[63].mxu1 }
 0x347   : > { %v1798_v53 = vadd.f32 %v1797_v51, %v1696_v47  ;;  %v1955_v3 = vld [vmem:[%s3402_s29 + $0x20] sm:$0xff] (%p3508_p2) }
 0x348   : > { %1901 = vst [vmem:[%s3402_s29 + $0x60] sm:$0xff] %v1796_v50  ;;  %v1957_v4 = vld [vmem:[%s3402_s29 + $0x28] sm:$0xff] (%p3508_p2)  ;;  %1956 = vst [vmem:[%s1934_s10 + $0x40] sm:$0xff] (%p3508_p2), %v1955_v3 }
 0x349   : > { %1902 = vst [vmem:[%s3402_s29 + $0x68] sm:$0xff] %v1798_v53  ;;  %v1866_v55 = vpop.f32.mrb[64].mxu1  ;;  %1958 = vst [vmem:[%s1934_s10 + $0x48] sm:$0xff] (%p3508_p2), %v1957_v4 }
 0x34a   : > { %v1867_v58 = vadd.f32 %v1866_v55, %v1681_v54  ;;  %v1868_v60 = vpop.f32.mrb[65].mxu1 }
 0x34b   : > { %v1869_v62 = vadd.f32 %v1868_v60, %v1681_v54  ;;  %v1963_v7 = vld [vmem:[%s3402_s29 + $0x40] sm:$0xff] (%p3508_p2) }
 0x34c   : > { %1891 = vst [vmem:[%s3402_s29 + $0x10] sm:$0xff] %v1867_v58  ;;  %v1965_v8 = vld [vmem:[%s3402_s29 + $0x48] sm:$0xff] (%p3508_p2)  ;;  %1964 = vst [vmem:[%s1934_s10 + $0x80] sm:$0xff] (%p3508_p2), %v1963_v7 }
 0x34d   : > { %1892 = vst [vmem:[%s3402_s29 + $0x18] sm:$0xff] %v1869_v62  ;;  %v1872_v63 = vpop.f32.mrb[66].mxu1  ;;  %1966 = vst [vmem:[%s1934_s10 + $0x88] sm:$0xff] (%p3508_p2), %v1965_v8 }
 0x34e   : > { %v1873_v0 = vadd.f32 %v1872_v63, %v1686_v39  ;;  %v1874_v16 = vpop.f32.mrb[67].mxu1 }
 0x34f   : > { %v1875_v17 = vadd.f32 %v1874_v16, %v1686_v39  ;;  %v1971_v11 = vld [vmem:[%s3402_s29 + $0x60] sm:$0xff] (%p3508_p2) }
 0x350   : > { %1895 = vst [vmem:[%s3402_s29 + $0x30] sm:$0xff] %v1873_v0  ;;  %v1973_v12 = vld [vmem:[%s3402_s29 + $0x68] sm:$0xff] (%p3508_p2)  ;;  %1972 = vst [vmem:[%s1934_s10 + $0xc0] sm:$0xff] (%p3508_p2), %v1971_v11 }
 0x351   : > { %1896 = vst [vmem:[%s3402_s29 + $0x38] sm:$0xff] %v1875_v17  ;;  %v1878_v34 = vpop.f32.mrb[68].mxu1  ;;  %1974 = vst [vmem:[%s1934_s10 + $0xc8] sm:$0xff] (%p3508_p2), %v1973_v12 }
 0x352   : > { %v1879_v18 = vadd.f32 %v1878_v34, %v1691_v44  ;;  %v1880_v19 = vpop.f32.mrb[69].mxu1 }
 0x353   : > { %v1881_v20 = vadd.f32 %v1880_v19, %v1691_v44  ;;  %1929 = sbr.rel (!%p3508_p2) target bundleno = 866 (0x362), region = 91  ;;  %v1951_v59 = vld [vmem:[%s3402_s29 + $0x10] sm:$0xff] (%p3508_p2) }
 0x354   : > { %1899 = vst [vmem:[%s3402_s29 + $0x50] sm:$0xff] %v1879_v18  ;;  %v1953_v2 = vld [vmem:[%s3402_s29 + $0x18] sm:$0xff] (%p3508_p2)  ;;  %1952 = vst [vmem:[%s1934_s10 + $0x10] sm:$0xff] (%p3508_p2), %v1951_v59 }
 0x355   : > { %1900 = vst [vmem:[%s3402_s29 + $0x58] sm:$0xff] %v1881_v20  ;;  %v1884_v22 = vpop.f32.mrb[70].mxu1  ;;  %1954 = vst [vmem:[%s1934_s10 + $0x18] sm:$0xff] (%p3508_p2), %v1953_v2 }
 0x356   : > { %v1885_v28 = vadd.f32 %v1884_v22, %v1696_v47  ;;  %v1886_v29 = vpop.f32.mrb[71].mxu1 }
 0x357   : > { %v1887_v30 = vadd.f32 %v1886_v29, %v1696_v47  ;;  %v1959_v5 = vld [vmem:[%s3402_s29 + $0x30] sm:$0xff] (%p3508_p2) }
 0x358   : > { %1903 = vst [vmem:[%s3402_s29 + $0x70] sm:$0xff] %v1885_v28  ;;  %v1961_v6 = vld [vmem:[%s3402_s29 + $0x38] sm:$0xff] (%p3508_p2)  ;;  %1960 = vst [vmem:[%s1934_s10 + $0x50] sm:$0xff] (%p3508_p2), %v1959_v5 }
 0x359   : > { %1904 = vst [vmem:[%s3402_s29 + $0x78] sm:$0xff] %v1887_v30  ;;  %1962 = vst [vmem:[%s1934_s10 + $0x58] sm:$0xff] (%p3508_p2), %v1961_v6 }
 0x35b   : > { %v1967_v9 = vld [vmem:[%s3402_s29 + $0x50] sm:$0xff] }
 0x35c   : > { %v1969_v10 = vld [vmem:[%s3402_s29 + $0x58] sm:$0xff]  ;;  %1968 = vst [vmem:[%s1934_s10 + $0x90] sm:$0xff] %v1967_v9 }
 0x35d   : > { %1970 = vst [vmem:[%s1934_s10 + $0x98] sm:$0xff] %v1969_v10 }
 0x35f   : > { %v1975_v13 = vld [vmem:[%s3402_s29 + $0x70] sm:$0xff] }
 0x360   : > { %1976 = vst [vmem:[%s1934_s10 + $0xd0] sm:$0xff] %v1975_v13  ;;  %v1977_v14 = vld [vmem:[%s3402_s29 + $0x78] sm:$0xff] }
 0x361   : > { %1978 = vst [vmem:[%s1934_s10 + $0xd8] sm:$0xff] %v1977_v14 }
 0x362 PF: > { %s23_s19 = sadd.s32 1, %s2541_s19   ;;  %s3511_s26 = sld [smem:[#allocation15_spill]] }
 0x363   : > { %p20_p3 = scmp.ge.s32.totalorder %s23_s19, 6   ;;  %s3512_s8 = sld [smem:[#allocation12_spill]] }
 0x364   : > { %s3513_s12 = sld [smem:[#allocation13_spill]]  ;;  %s3514_s13 = smov %s2521_s14 }
 0x365   : > { %s3516_s15 = smov %s2533_s17  ;;  %s3517_s16 = smov %s2537_s18 }
 0x366   :  { %22 = sbr.rel (!%p20_p3) target bundleno = 11 (0xb), region = 170 }
 0x368   : > { %s3515_s14 = smov %s3511_s26 }
 0x369   : > { %s3518_s17 = smov %s3512_s8 }
 0x36a   : > { %s3519_s18 = smov %s3513_s12 }
 0x36d   :  { %2026 = vsyncpa [#allocation4], 1 }
 0x36e   :  { %2028 = vsyncpa [#allocation4 + $0x1], 1 }
 0x36f   :  { %2029 = vsyncpa [#allocation6], 1 }

</bundles_post_ra>
